<compile_context>
chip_gen: v7x
topology: tpu7x:2x2x1
jax: 0.10.0
libtpu: 0.0.40
codegen_flags: <defaults>
</compile_context>

<pallas_src>
import functools

import jax
import jax.numpy as jnp
from jax.experimental import pallas as pl
from jax.experimental.pallas import tpu as pltpu

EPS = 1e-5
# Sized for v7x (64 MiB physical / 32 MiB scoped default); also valid on
# v5e / v6e (128 MiB physical).
_VMEM_LIMIT_BYTES = 32 * 1024 * 1024
# Target bytes per input/output block of the lane-dense BN/ReLU pass.
_PASS2_BLOCK_BYTES = 2 * 1024 * 1024


def _pick_divisor(extent, target):
    """Largest divisor of `extent` that is <= target (>= 1)."""
    t = max(1, min(extent, target))
    while extent % t:
        t -= 1
    return t


def _pick_row_tile(rows, target):
    """Row tile for a 2-D (rows, lanes) block: a multiple of 8 that divides
    `rows`, or the full extent (full-dim blocks are always legal)."""
    if rows <= target:
        return rows
    for cand in range(target - target % 8, 7, -8):
        if rows % cand == 0:
            return cand
    return rows


# ---------------------------------------------------------------------------
# Pass 1: conv + per-tile BN partial statistics
# ---------------------------------------------------------------------------
def conv_stats_kernel(xpad_ref, w_ref, out_ref, sum_ref, sumsq_ref, acc_ref,
                      *, kh, kw):
    # xpad_ref : (1, Hp, Wp, Cin)    padded input sample (compute dtype, cast hoisted)
    # w_ref    : (KH, KW, Cin, Cout) weights (compute dtype, cast hoisted)
    # out_ref  : (1, TH, Wo, Cout)   conv output tile (f32 intermediate)
    # sum_ref  : (1, 1, 1, Cout)     per-tile per-channel sum   (f32)
    # sumsq_ref: (1, 1, 1, Cout)     per-tile per-channel sum^2 (f32)
    # acc_ref  : (1, TH, Wo, Cout)   f32 VMEM scratch accumulator
    _, th, wo, cout = out_ref.shape
    t = pl.program_id(1)
    h0 = t * th

    # Padded-input rows needed by this output-row tile (halo of kh-1 rows).
    xwin = xpad_ref[:, pl.ds(h0, th + kh - 1), :, :]     # (1, th+kh-1, Wp, Cin)
    wk = w_ref[...]                                      # read weights once

    # MXU contraction over Cin for each of the kh*kw taps, accumulated into a
    # VMEM f32 scratch accumulator (no per-tap casts; inputs already in the
    # compute dtype).  The tap shifts are static slices of the VMEM-resident
    # window, so they overlap with the MXU work.
    # TODO(synk): a single fused contraction over K = kh*kw*Cin (im2col) would
    #             use the MXU depth better; skipped here because with Cin=4 the
    #             lane-dim patch concat costs relayouts and this layer is
    #             memory-bound, so MXU depth is not the bottleneck.
    acc_ref[...] = jnp.zeros_like(acc_ref)
    for dh in range(kh):
        for dw in range(kw):
            acc_ref[...] += jnp.einsum(
                "nhwc,co->nhwo",
                xwin[:, dh:dh + th, dw:dw + wo, :],
                wk[dh, dw],
                preferred_element_type=jnp.float32,
            )

    acc = acc_ref[...]
    out_ref[...] = acc.astype(out_ref.dtype)

    # One-pass BN statistics for this tile: sum and sum of squares (f32),
    # combined across tiles outside the kernel (var = E[x^2] - mean^2).
    sum_ref[...] = jnp.sum(acc, axis=(0, 1, 2), keepdims=True)
    sumsq_ref[...] = jnp.sum(acc * acc, axis=(0, 1, 2), keepdims=True)


# ---------------------------------------------------------------------------
# Pass 2: lane-dense BN apply + ReLU
# ---------------------------------------------------------------------------
def bn_relu_kernel(y_ref, scale_ref, bias_ref, out_ref):
    # y_ref              : (TR, L) f32 conv-output rows, L = Wo*Cout (lane-dense)
    # scale_ref/bias_ref : (1, L)  f32 folded BN scale / bias (tiled over Wo)
    # out_ref            : (TR, L) final output rows
    y = y_ref[...] * scale_ref[...] + bias_ref[...]
    out_ref[...] = jnp.maximum(y, 0.0).astype(out_ref.dtype)


# ---------------------------------------------------------------------------
# Wrapper
# ---------------------------------------------------------------------------
@functools.partial(jax.jit, static_argnames=("padding", "compute_dtype"))
def basic_conv(x_nchw, w_oihw, gamma, beta, padding=1,
               compute_dtype=jnp.bfloat16):
    """BasicConv forward. x: NCHW, w: OIHW (PyTorch conventions).

    compute_dtype: dtype of the MXU matmul inputs (bf16 recommended on
    v6e/v7x; f32 reproduces PyTorch bit-for-bit semantics).  All accumulation
    and all BatchNorm math stay in f32 on every generation.
    """
    N, Cin, H, W = x_nchw.shape
    Cout, _, KH, KW = w_oihw.shape
    Ho = H + 2 * padding - KH + 1
    Wo = W + 2 * padding - KW + 1
    Hp, Wp = H + 2 * padding, W + 2 * padding
    K = KH * KW * Cin

    # --- glue: layout + zero padding (casts hoisted, done once per call) ---
    # TODO(synk): in a full network keep activations NHWC end-to-end so these
    #             per-layer NCHW<->NHWC transposes (and ideally the pad, via a
    #             halo-aware index_map) disappear from the per-layer path.
    x = jnp.transpose(x_nchw, (0, 2, 3, 1)).astype(compute_dtype)      # NHWC
    xp = jnp.pad(x, ((0, 0), (padding, padding), (padding, padding), (0, 0)))
    w4 = jnp.transpose(w_oihw, (2, 3, 1, 0)).astype(compute_dtype)     # (KH,KW,Cin,Cout)

    # --- pass 1: row-tiled conv + per-tile BN partial statistics ---
    TH = _pick_divisor(Ho, max(8, Ho // 4))      # output-row tile
    T = Ho // TH

    conv_cost = pl.CostEstimate(
        flops=2 * N * Ho * Wo * K * Cout + 4 * N * Ho * Wo * Cout,
        transcendentals=0,
        bytes_accessed=(xp.size * xp.dtype.itemsize
                        + w4.size * w4.dtype.itemsize
                        + N * Ho * Wo * Cout * 4
                        + 2 * N * T * Cout * 4))

    conv_out, sums, sumsqs = pl.pallas_call(
        functools.partial(conv_stats_kernel, kh=KH, kw=KW),
        grid=(N, T),
        in_specs=[
            # Whole padded sample; resident across the inner row-tile axis.
            # TODO(synk): for large H switch to a halo-aware manual DMA of just
            #             the TH+KH-1 padded rows needed per tile.
            pl.BlockSpec((1, Hp, Wp, Cin), lambda n, t: (n, 0, 0, 0)),
            pl.BlockSpec((KH, KW, Cin, Cout), lambda n, t: (0, 0, 0, 0)),
        ],
        out_specs=(
            pl.BlockSpec((1, TH, Wo, Cout), lambda n, t: (n, t, 0, 0)),
            pl.BlockSpec((1, 1, 1, Cout), lambda n, t: (n, t, 0, 0)),
            pl.BlockSpec((1, 1, 1, Cout), lambda n, t: (n, t, 0, 0)),
        ),
        out_shape=(
            jax.ShapeDtypeStruct((N, Ho, Wo, Cout), jnp.float32),
            jax.ShapeDtypeStruct((N, T, 1, Cout), jnp.float32),
            jax.ShapeDtypeStruct((N, T, 1, Cout), jnp.float32),
        ),
        scratch_shapes=[pltpu.VMEM((1, TH, Wo, Cout), jnp.float32)],
        compiler_params=pltpu.CompilerParams(
            dimension_semantics=("parallel", "parallel"),
            vmem_limit_bytes=_VMEM_LIMIT_BYTES),
        cost_estimate=conv_cost,
    )(xp, w4)

    # --- glue: combine partials -> folded per-channel scale / bias (f32) ---
    count = float(N * Ho * Wo)
    mean = jnp.sum(sums, axis=(0, 1, 2)) / count                      # (Cout,)
    var = jnp.maximum(jnp.sum(sumsqs, axis=(0, 1, 2)) / count - mean * mean,
                      0.0)                                            # biased
    inv_std = jax.lax.rsqrt(var + EPS)
    scale = gamma.astype(jnp.float32) * inv_std
    bias = beta.astype(jnp.float32) - mean * scale

    # --- pass 2: lane-dense BN apply + ReLU over (N*Ho, Wo*Cout) rows ---
    rows, L = N * Ho, Wo * Cout
    y2d = conv_out.reshape(rows, L)                 # contiguous collapse: free
    scale_row = jnp.tile(scale, Wo).reshape(1, L)   # index l = w*Cout + c
    bias_row = jnp.tile(bias, Wo).reshape(1, L)
    TR = _pick_row_tile(rows, max(8, _PASS2_BLOCK_BYTES // (L * 4)))

    bn_cost = pl.CostEstimate(
        flops=3 * rows * L,
        transcendentals=0,
        bytes_accessed=rows * L * 4 + rows * L * x_nchw.dtype.itemsize
                       + 2 * L * 4)

    out2d = pl.pallas_call(
        bn_relu_kernel,
        grid=(rows // TR,),
        in_specs=[
            pl.BlockSpec((TR, L), lambda r: (r, 0)),
            pl.BlockSpec((1, L), lambda r: (0, 0)),
            pl.BlockSpec((1, L), lambda r: (0, 0)),
        ],
        out_specs=pl.BlockSpec((TR, L), lambda r: (r, 0)),
        out_shape=jax.ShapeDtypeStruct((rows, L), x_nchw.dtype),
        compiler_params=pltpu.CompilerParams(
            dimension_semantics=("parallel",),
            vmem_limit_bytes=_VMEM_LIMIT_BYTES),
        cost_estimate=bn_cost,
    )(y2d, scale_row, bias_row)

    out_nhwc = out2d.reshape(N, Ho, Wo, Cout)
    return jnp.transpose(out_nhwc, (0, 3, 1, 2))                      # NCHW


# ---------------------------------------------------------------------------
# Pure-JAX reference (PyTorch BasicConv.forward semantics)
# ---------------------------------------------------------------------------
def reference_basic_conv(x_nchw, w_oihw, gamma, beta, padding=1,
                         compute_dtype=jnp.float32):
    """Reference.  `compute_dtype` rounds the conv inputs (f32 accumulate),
    matching the kernel's compute-dtype option; f32 = exact PyTorch math."""
    y = jax.lax.conv_general_dilated(
        x_nchw.astype(compute_dtype),
        w_oihw.astype(compute_dtype),
        window_strides=(1, 1),
        padding=[(padding, padding), (padding, padding)],
        dimension_numbers=("NCHW", "OIHW", "NCHW"),
        preferred_element_type=jnp.float32,
    )
    mean = jnp.mean(y, axis=(0, 2, 3), keepdims=True)
    var = jnp.mean((y - mean) ** 2, axis=(0, 2, 3), keepdims=True)
    y = (y - mean) * jax.lax.rsqrt(var + EPS)
    y = y * gamma.reshape(1, -1, 1, 1) + beta.reshape(1, -1, 1, 1)
    return jnp.maximum(y, 0.0).astype(x_nchw.dtype)


if __name__ == "__main__":
    # BasicConv(in_planes=4, out_planes=8, kernel_size=3, padding=1)
    N, Cin, H, W = 2, 4, 16, 16
    Cout, KH, KW = 8, 3, 3
    padding = 1

    key = jax.random.PRNGKey(0)
    kx, kw_, kg, kb = jax.random.split(key, 4)
    x = jax.random.normal(kx, (N, Cin, H, W), dtype=jnp.float32)
    w = jax.random.normal(kw_, (Cout, Cin, KH, KW), dtype=jnp.float32) * 0.1
    gamma = 1.0 + 0.1 * jax.random.normal(kg, (Cout,), dtype=jnp.float32)
    beta = 0.1 * jax.random.normal(kb, (Cout,), dtype=jnp.float32)

    # Exact-precision path (f32 MXU inputs): matches PyTorch f32 semantics.
    out_f32 = jax.block_until_ready(
        basic_conv(x, w, gamma, beta, padding=padding,
                   compute_dtype=jnp.float32))
    ref_f32 = reference_basic_conv(x, w, gamma, beta, padding=padding,
                                   compute_dtype=jnp.float32)
    assert out_f32.shape == (N, Cout, H, W), out_f32.shape
    assert jnp.allclose(out_f32, ref_f32, atol=1e-4, rtol=1e-4), (
        float(jnp.max(jnp.abs(out_f32 - ref_f32))))

    # bf16 MXU-input path (recommended on v6e/v7x); BN statistics stay f32.
    out_bf16 = jax.block_until_ready(
        basic_conv(x, w, gamma, beta, padding=padding,
                   compute_dtype=jnp.bfloat16))
    ref_bf16 = reference_basic_conv(x, w, gamma, beta, padding=padding,
                                    compute_dtype=jnp.bfloat16)
    assert jnp.allclose(out_bf16, ref_bf16, atol=1e-2, rtol=1e-2), (
        float(jnp.max(jnp.abs(out_bf16 - ref_bf16))))

    print("KERNEL_OK")
</pallas_src>

<mosaic_0001>
module attributes {stable_mosaic.version = 11 : i64} {
  func.func @conv_stats_kernel(%arg0: i32, %arg1: i32, %arg2: memref<1x18x18x4xf32, #tpu.memory_space<vmem>>, %arg3: memref<3x3x4x8xf32, #tpu.memory_space<vmem>>, %arg4: memref<1x8x16x8xf32, #tpu.memory_space<vmem>>, %arg5: memref<1x1x1x8xf32, #tpu.memory_space<vmem>>, %arg6: memref<1x1x1x8xf32, #tpu.memory_space<vmem>>, %arg7: memref<1x8x16x8xf32, #tpu.memory_space<vmem>>) attributes {dimension_semantics = [#tpu.dimension_semantics<parallel>, #tpu.dimension_semantics<parallel>], iteration_bounds = array<i64: 2, 2>, scalar_prefetch = 0 : i64, scratch_operands = 1 : i64, tpu.core_type = #tpu.core_type<tc>, window_params = [{transform_indices = @transform_0, window_bounds = array<i64: 1, 18, 18, 4>}, {pipeline_mode = #tpu.pipeline_mode<synchronous>, transform_indices = @transform_1, window_bounds = array<i64: 3, 3, 4, 8>}, {transform_indices = @transform_2, window_bounds = array<i64: 1, 8, 16, 8>}, {transform_indices = @transform_3, window_bounds = array<i64: 1, 1, 1, 8>}, {transform_indices = @transform_4, window_bounds = array<i64: 1, 1, 1, 8>}]} {
    %c8_i32 = arith.constant 8 : i32
    %0 = arith.muli %arg1, %c8_i32 : i32
    %c0 = arith.constant 0 : index
    %1 = arith.index_cast %0 : i32 to index
    %c0_0 = arith.constant 0 : index
    %c0_1 = arith.constant 0 : index
    %2 = vector.load %arg2[%c0, %1, %c0_0, %c0_1] : memref<1x18x18x4xf32, #tpu.memory_space<vmem>>, vector<1x10x18x4xf32>
    %c0_2 = arith.constant 0 : index
    %c0_3 = arith.constant 0 : index
    %c0_4 = arith.constant 0 : index
    %c0_5 = arith.constant 0 : index
    %3 = vector.load %arg3[%c0_2, %c0_3, %c0_4, %c0_5] : memref<3x3x4x8xf32, #tpu.memory_space<vmem>>, vector<3x3x4x8xf32>
    %cst = arith.constant 0.000000e+00 : f32
    %4 = vector.broadcast %cst : f32 to vector<1x8x16x8xf32>
    %c0_6 = arith.constant 0 : index
    %c0_7 = arith.constant 0 : index
    %c0_8 = arith.constant 0 : index
    %c0_9 = arith.constant 0 : index
    %5 = vector.load %arg7[%c0_6, %c0_7, %c0_8, %c0_9] : memref<1x8x16x8xf32, #tpu.memory_space<vmem>>, vector<1x8x16x8xf32>
    tpu.vector_store %arg7[%c0_6, %c0_7, %c0_8, %c0_9], %4 {strides = array<i32>} : memref<1x8x16x8xf32, #tpu.memory_space<vmem>>, vector<1x8x16x8xf32>,
    %c0_10 = arith.constant 0 : index
    %c0_11 = arith.constant 0 : index
    %c0_12 = arith.constant 0 : index
    %c0_13 = arith.constant 0 : index
    %6 = vector.load %arg7[%c0_10, %c0_11, %c0_12, %c0_13] : memref<1x8x16x8xf32, #tpu.memory_space<vmem>>, vector<1x8x16x8xf32>
    %7 = vector.extract_strided_slice %2 {offsets = [0, 0, 0, 0], sizes = [1, 8, 16, 4], strides = [1, 1, 1, 1]} : vector<1x10x18x4xf32> to vector<1x8x16x4xf32>
    %8 = vector.extract_strided_slice %3 {offsets = [0, 0, 0, 0], sizes = [1, 1, 4, 8], strides = [1, 1, 1, 1]} : vector<3x3x4x8xf32> to vector<1x1x4x8xf32>
    %9 = vector.shape_cast %8 : vector<1x1x4x8xf32> to vector<4x8xf32>
    "tpu.trace_start"() <{level = 10 : i32, message = "nhwc,co->nhwo"}> : () -> ()
    %cst_14 = arith.constant dense<0.000000e+00> : vector<1x8x16x8xf32>
    %10 = tpu.matmul %7, %9, %cst_14 {dimension_numbers = #tpu.dot_dimension_numbers<[3], [0], [0, 1, 2], [1], [0, 0, 0, 1, 0, 2, 1, 1], [], []>} : vector<1x8x16x4xf32>, vector<4x8xf32>, vector<1x8x16x8xf32> -> vector<1x8x16x8xf32>
    "tpu.trace_stop"() : () -> ()
    %11 = arith.addf %6, %10 : vector<1x8x16x8xf32>
    %c0_15 = arith.constant 0 : index
    %c0_16 = arith.constant 0 : index
    %c0_17 = arith.constant 0 : index
    %c0_18 = arith.constant 0 : index
    %12 = vector.load %arg7[%c0_15, %c0_16, %c0_17, %c0_18] : memref<1x8x16x8xf32, #tpu.memory_space<vmem>>, vector<1x8x16x8xf32>
    tpu.vector_store %arg7[%c0_15, %c0_16, %c0_17, %c0_18], %11 {strides = array<i32>} : memref<1x8x16x8xf32, #tpu.memory_space<vmem>>, vector<1x8x16x8xf32>,
    %c0_19 = arith.constant 0 : index
    %c0_20 = arith.constant 0 : index
    %c0_21 = arith.constant 0 : index
    %c0_22 = arith.constant 0 : index
    %13 = vector.load %arg7[%c0_19, %c0_20, %c0_21, %c0_22] : memref<1x8x16x8xf32, #tpu.memory_space<vmem>>, vector<1x8x16x8xf32>
    %14 = vector.extract_strided_slice %2 {offsets = [0, 0, 1, 0], sizes = [1, 8, 16, 4], strides = [1, 1, 1, 1]} : vector<1x10x18x4xf32> to vector<1x8x16x4xf32>
    %15 = vector.extract_strided_slice %3 {offsets = [0, 1, 0, 0], sizes = [1, 1, 4, 8], strides = [1, 1, 1, 1]} : vector<3x3x4x8xf32> to vector<1x1x4x8xf32>
    %16 = vector.shape_cast %15 : vector<1x1x4x8xf32> to vector<4x8xf32>
    "tpu.trace_start"() <{level = 10 : i32, message = "nhwc,co->nhwo"}> : () -> ()
    %cst_23 = arith.constant dense<0.000000e+00> : vector<1x8x16x8xf32>
    %17 = tpu.matmul %14, %16, %cst_23 {dimension_numbers = #tpu.dot_dimension_numbers<[3], [0], [0, 1, 2], [1], [0, 0, 0, 1, 0, 2, 1, 1], [], []>} : vector<1x8x16x4xf32>, vector<4x8xf32>, vector<1x8x16x8xf32> -> vector<1x8x16x8xf32>
    "tpu.trace_stop"() : () -> ()
    %18 = arith.addf %13, %17 : vector<1x8x16x8xf32>
    %c0_24 = arith.constant 0 : index
    %c0_25 = arith.constant 0 : index
    %c0_26 = arith.constant 0 : index
    %c0_27 = arith.constant 0 : index
    %19 = vector.load %arg7[%c0_24, %c0_25, %c0_26, %c0_27] : memref<1x8x16x8xf32, #tpu.memory_space<vmem>>, vector<1x8x16x8xf32>
    tpu.vector_store %arg7[%c0_24, %c0_25, %c0_26, %c0_27], %18 {strides = array<i32>} : memref<1x8x16x8xf32, #tpu.memory_space<vmem>>, vector<1x8x16x8xf32>,
    %c0_28 = arith.constant 0 : index
    %c0_29 = arith.constant 0 : index
    %c0_30 = arith.constant 0 : index
    %c0_31 = arith.constant 0 : index
    %20 = vector.load %arg7[%c0_28, %c0_29, %c0_30, %c0_31] : memref<1x8x16x8xf32, #tpu.memory_space<vmem>>, vector<1x8x16x8xf32>
    %21 = vector.extract_strided_slice %2 {offsets = [0, 0, 2, 0], sizes = [1, 8, 16, 4], strides = [1, 1, 1, 1]} : vector<1x10x18x4xf32> to vector<1x8x16x4xf32>
    %22 = vector.extract_strided_slice %3 {offsets = [0, 2, 0, 0], sizes = [1, 1, 4, 8], strides = [1, 1, 1, 1]} : vector<3x3x4x8xf32> to vector<1x1x4x8xf32>
    %23 = vector.shape_cast %22 : vector<1x1x4x8xf32> to vector<4x8xf32>
    "tpu.trace_start"() <{level = 10 : i32, message = "nhwc,co->nhwo"}> : () -> ()
    %cst_32 = arith.constant dense<0.000000e+00> : vector<1x8x16x8xf32>
    %24 = tpu.matmul %21, %23, %cst_32 {dimension_numbers = #tpu.dot_dimension_numbers<[3], [0], [0, 1, 2], [1], [0, 0, 0, 1, 0, 2, 1, 1], [], []>} : vector<1x8x16x4xf32>, vector<4x8xf32>, vector<1x8x16x8xf32> -> vector<1x8x16x8xf32>
    "tpu.trace_stop"() : () -> ()
    %25 = arith.addf %20, %24 : vector<1x8x16x8xf32>
    %c0_33 = arith.constant 0 : index
    %c0_34 = arith.constant 0 : index
    %c0_35 = arith.constant 0 : index
    %c0_36 = arith.constant 0 : index
    %26 = vector.load %arg7[%c0_33, %c0_34, %c0_35, %c0_36] : memref<1x8x16x8xf32, #tpu.memory_space<vmem>>, vector<1x8x16x8xf32>
    tpu.vector_store %arg7[%c0_33, %c0_34, %c0_35, %c0_36], %25 {strides = array<i32>} : memref<1x8x16x8xf32, #tpu.memory_space<vmem>>, vector<1x8x16x8xf32>,
    %c0_37 = arith.constant 0 : index
    %c0_38 = arith.constant 0 : index
    %c0_39 = arith.constant 0 : index
    %c0_40 = arith.constant 0 : index
    %27 = vector.load %arg7[%c0_37, %c0_38, %c0_39, %c0_40] : memref<1x8x16x8xf32, #tpu.memory_space<vmem>>, vector<1x8x16x8xf32>
    %28 = vector.extract_strided_slice %2 {offsets = [0, 1, 0, 0], sizes = [1, 8, 16, 4], strides = [1, 1, 1, 1]} : vector<1x10x18x4xf32> to vector<1x8x16x4xf32>
    %29 = vector.extract_strided_slice %3 {offsets = [1, 0, 0, 0], sizes = [1, 1, 4, 8], strides = [1, 1, 1, 1]} : vector<3x3x4x8xf32> to vector<1x1x4x8xf32>
    %30 = vector.shape_cast %29 : vector<1x1x4x8xf32> to vector<4x8xf32>
    "tpu.trace_start"() <{level = 10 : i32, message = "nhwc,co->nhwo"}> : () -> ()
    %cst_41 = arith.constant dense<0.000000e+00> : vector<1x8x16x8xf32>
    %31 = tpu.matmul %28, %30, %cst_41 {dimension_numbers = #tpu.dot_dimension_numbers<[3], [0], [0, 1, 2], [1], [0, 0, 0, 1, 0, 2, 1, 1], [], []>} : vector<1x8x16x4xf32>, vector<4x8xf32>, vector<1x8x16x8xf32> -> vector<1x8x16x8xf32>
    "tpu.trace_stop"() : () -> ()
    %32 = arith.addf %27, %31 : vector<1x8x16x8xf32>
    %c0_42 = arith.constant 0 : index
    %c0_43 = arith.constant 0 : index
    %c0_44 = arith.constant 0 : index
    %c0_45 = arith.constant 0 : index
    %33 = vector.load %arg7[%c0_42, %c0_43, %c0_44, %c0_45] : memref<1x8x16x8xf32, #tpu.memory_space<vmem>>, vector<1x8x16x8xf32>
    tpu.vector_store %arg7[%c0_42, %c0_43, %c0_44, %c0_45], %32 {strides = array<i32>} : memref<1x8x16x8xf32, #tpu.memory_space<vmem>>, vector<1x8x16x8xf32>,
    %c0_46 = arith.constant 0 : index
    %c0_47 = arith.constant 0 : index
    %c0_48 = arith.constant 0 : index
    %c0_49 = arith.constant 0 : index
    %34 = vector.load %arg7[%c0_46, %c0_47, %c0_48, %c0_49] : memref<1x8x16x8xf32, #tpu.memory_space<vmem>>, vector<1x8x16x8xf32>
    %35 = vector.extract_strided_slice %2 {offsets = [0, 1, 1, 0], sizes = [1, 8, 16, 4], strides = [1, 1, 1, 1]} : vector<1x10x18x4xf32> to vector<1x8x16x4xf32>
    %36 = vector.extract_strided_slice %3 {offsets = [1, 1, 0, 0], sizes = [1, 1, 4, 8], strides = [1, 1, 1, 1]} : vector<3x3x4x8xf32> to vector<1x1x4x8xf32>
    %37 = vector.shape_cast %36 : vector<1x1x4x8xf32> to vector<4x8xf32>
    "tpu.trace_start"() <{level = 10 : i32, message = "nhwc,co->nhwo"}> : () -> ()
    %cst_50 = arith.constant dense<0.000000e+00> : vector<1x8x16x8xf32>
    %38 = tpu.matmul %35, %37, %cst_50 {dimension_numbers = #tpu.dot_dimension_numbers<[3], [0], [0, 1, 2], [1], [0, 0, 0, 1, 0, 2, 1, 1], [], []>} : vector<1x8x16x4xf32>, vector<4x8xf32>, vector<1x8x16x8xf32> -> vector<1x8x16x8xf32>
    "tpu.trace_stop"() : () -> ()
    %39 = arith.addf %34, %38 : vector<1x8x16x8xf32>
    %c0_51 = arith.constant 0 : index
    %c0_52 = arith.constant 0 : index
    %c0_53 = arith.constant 0 : index
    %c0_54 = arith.constant 0 : index
    %40 = vector.load %arg7[%c0_51, %c0_52, %c0_53, %c0_54] : memref<1x8x16x8xf32, #tpu.memory_space<vmem>>, vector<1x8x16x8xf32>
    tpu.vector_store %arg7[%c0_51, %c0_52, %c0_53, %c0_54], %39 {strides = array<i32>} : memref<1x8x16x8xf32, #tpu.memory_space<vmem>>, vector<1x8x16x8xf32>,
    %c0_55 = arith.constant 0 : index
    %c0_56 = arith.constant 0 : index
    %c0_57 = arith.constant 0 : index
    %c0_58 = arith.constant 0 : index
    %41 = vector.load %arg7[%c0_55, %c0_56, %c0_57, %c0_58] : memref<1x8x16x8xf32, #tpu.memory_space<vmem>>, vector<1x8x16x8xf32>
    %42 = vector.extract_strided_slice %2 {offsets = [0, 1, 2, 0], sizes = [1, 8, 16, 4], strides = [1, 1, 1, 1]} : vector<1x10x18x4xf32> to vector<1x8x16x4xf32>
    %43 = vector.extract_strided_slice %3 {offsets = [1, 2, 0, 0], sizes = [1, 1, 4, 8], strides = [1, 1, 1, 1]} : vector<3x3x4x8xf32> to vector<1x1x4x8xf32>
    %44 = vector.shape_cast %43 : vector<1x1x4x8xf32> to vector<4x8xf32>
    "tpu.trace_start"() <{level = 10 : i32, message = "nhwc,co->nhwo"}> : () -> ()
    %cst_59 = arith.constant dense<0.000000e+00> : vector<1x8x16x8xf32>
    %45 = tpu.matmul %42, %44, %cst_59 {dimension_numbers = #tpu.dot_dimension_numbers<[3], [0], [0, 1, 2], [1], [0, 0, 0, 1, 0, 2, 1, 1], [], []>} : vector<1x8x16x4xf32>, vector<4x8xf32>, vector<1x8x16x8xf32> -> vector<1x8x16x8xf32>
    "tpu.trace_stop"() : () -> ()
    %46 = arith.addf %41, %45 : vector<1x8x16x8xf32>
    %c0_60 = arith.constant 0 : index
    %c0_61 = arith.constant 0 : index
    %c0_62 = arith.constant 0 : index
    %c0_63 = arith.constant 0 : index
    %47 = vector.load %arg7[%c0_60, %c0_61, %c0_62, %c0_63] : memref<1x8x16x8xf32, #tpu.memory_space<vmem>>, vector<1x8x16x8xf32>
    tpu.vector_store %arg7[%c0_60, %c0_61, %c0_62, %c0_63], %46 {strides = array<i32>} : memref<1x8x16x8xf32, #tpu.memory_space<vmem>>, vector<1x8x16x8xf32>,
    %c0_64 = arith.constant 0 : index
    %c0_65 = arith.constant 0 : index
    %c0_66 = arith.constant 0 : index
    %c0_67 = arith.constant 0 : index
    %48 = vector.load %arg7[%c0_64, %c0_65, %c0_66, %c0_67] : memref<1x8x16x8xf32, #tpu.memory_space<vmem>>, vector<1x8x16x8xf32>
    %49 = vector.extract_strided_slice %2 {offsets = [0, 2, 0, 0], sizes = [1, 8, 16, 4], strides = [1, 1, 1, 1]} : vector<1x10x18x4xf32> to vector<1x8x16x4xf32>
    %50 = vector.extract_strided_slice %3 {offsets = [2, 0, 0, 0], sizes = [1, 1, 4, 8], strides = [1, 1, 1, 1]} : vector<3x3x4x8xf32> to vector<1x1x4x8xf32>
    %51 = vector.shape_cast %50 : vector<1x1x4x8xf32> to vector<4x8xf32>
    "tpu.trace_start"() <{level = 10 : i32, message = "nhwc,co->nhwo"}> : () -> ()
    %cst_68 = arith.constant dense<0.000000e+00> : vector<1x8x16x8xf32>
    %52 = tpu.matmul %49, %51, %cst_68 {dimension_numbers = #tpu.dot_dimension_numbers<[3], [0], [0, 1, 2], [1], [0, 0, 0, 1, 0, 2, 1, 1], [], []>} : vector<1x8x16x4xf32>, vector<4x8xf32>, vector<1x8x16x8xf32> -> vector<1x8x16x8xf32>
    "tpu.trace_stop"() : () -> ()
    %53 = arith.addf %48, %52 : vector<1x8x16x8xf32>
    %c0_69 = arith.constant 0 : index
    %c0_70 = arith.constant 0 : index
    %c0_71 = arith.constant 0 : index
    %c0_72 = arith.constant 0 : index
    %54 = vector.load %arg7[%c0_69, %c0_70, %c0_71, %c0_72] : memref<1x8x16x8xf32, #tpu.memory_space<vmem>>, vector<1x8x16x8xf32>
    tpu.vector_store %arg7[%c0_69, %c0_70, %c0_71, %c0_72], %53 {strides = array<i32>} : memref<1x8x16x8xf32, #tpu.memory_space<vmem>>, vector<1x8x16x8xf32>,
    %c0_73 = arith.constant 0 : index
    %c0_74 = arith.constant 0 : index
    %c0_75 = arith.constant 0 : index
    %c0_76 = arith.constant 0 : index
    %55 = vector.load %arg7[%c0_73, %c0_74, %c0_75, %c0_76] : memref<1x8x16x8xf32, #tpu.memory_space<vmem>>, vector<1x8x16x8xf32>
    %56 = vector.extract_strided_slice %2 {offsets = [0, 2, 1, 0], sizes = [1, 8, 16, 4], strides = [1, 1, 1, 1]} : vector<1x10x18x4xf32> to vector<1x8x16x4xf32>
    %57 = vector.extract_strided_slice %3 {offsets = [2, 1, 0, 0], sizes = [1, 1, 4, 8], strides = [1, 1, 1, 1]} : vector<3x3x4x8xf32> to vector<1x1x4x8xf32>
    %58 = vector.shape_cast %57 : vector<1x1x4x8xf32> to vector<4x8xf32>
    "tpu.trace_start"() <{level = 10 : i32, message = "nhwc,co->nhwo"}> : () -> ()
    %cst_77 = arith.constant dense<0.000000e+00> : vector<1x8x16x8xf32>
    %59 = tpu.matmul %56, %58, %cst_77 {dimension_numbers = #tpu.dot_dimension_numbers<[3], [0], [0, 1, 2], [1], [0, 0, 0, 1, 0, 2, 1, 1], [], []>} : vector<1x8x16x4xf32>, vector<4x8xf32>, vector<1x8x16x8xf32> -> vector<1x8x16x8xf32>
    "tpu.trace_stop"() : () -> ()
    %60 = arith.addf %55, %59 : vector<1x8x16x8xf32>
    %c0_78 = arith.constant 0 : index
    %c0_79 = arith.constant 0 : index
    %c0_80 = arith.constant 0 : index
    %c0_81 = arith.constant 0 : index
    %61 = vector.load %arg7[%c0_78, %c0_79, %c0_80, %c0_81] : memref<1x8x16x8xf32, #tpu.memory_space<vmem>>, vector<1x8x16x8xf32>
    tpu.vector_store %arg7[%c0_78, %c0_79, %c0_80, %c0_81], %60 {strides = array<i32>} : memref<1x8x16x8xf32, #tpu.memory_space<vmem>>, vector<1x8x16x8xf32>,
    %c0_82 = arith.constant 0 : index
    %c0_83 = arith.constant 0 : index
    %c0_84 = arith.constant 0 : index
    %c0_85 = arith.constant 0 : index
    %62 = vector.load %arg7[%c0_82, %c0_83, %c0_84, %c0_85] : memref<1x8x16x8xf32, #tpu.memory_space<vmem>>, vector<1x8x16x8xf32>
    %63 = vector.extract_strided_slice %2 {offsets = [0, 2, 2, 0], sizes = [1, 8, 16, 4], strides = [1, 1, 1, 1]} : vector<1x10x18x4xf32> to vector<1x8x16x4xf32>
    %64 = vector.extract_strided_slice %3 {offsets = [2, 2, 0, 0], sizes = [1, 1, 4, 8], strides = [1, 1, 1, 1]} : vector<3x3x4x8xf32> to vector<1x1x4x8xf32>
    %65 = vector.shape_cast %64 : vector<1x1x4x8xf32> to vector<4x8xf32>
    "tpu.trace_start"() <{level = 10 : i32, message = "nhwc,co->nhwo"}> : () -> ()
    %cst_86 = arith.constant dense<0.000000e+00> : vector<1x8x16x8xf32>
    %66 = tpu.matmul %63, %65, %cst_86 {dimension_numbers = #tpu.dot_dimension_numbers<[3], [0], [0, 1, 2], [1], [0, 0, 0, 1, 0, 2, 1, 1], [], []>} : vector<1x8x16x4xf32>, vector<4x8xf32>, vector<1x8x16x8xf32> -> vector<1x8x16x8xf32>
    "tpu.trace_stop"() : () -> ()
    %67 = arith.addf %62, %66 : vector<1x8x16x8xf32>
    %c0_87 = arith.constant 0 : index
    %c0_88 = arith.constant 0 : index
    %c0_89 = arith.constant 0 : index
    %c0_90 = arith.constant 0 : index
    %68 = vector.load %arg7[%c0_87, %c0_88, %c0_89, %c0_90] : memref<1x8x16x8xf32, #tpu.memory_space<vmem>>, vector<1x8x16x8xf32>
    tpu.vector_store %arg7[%c0_87, %c0_88, %c0_89, %c0_90], %67 {strides = array<i32>} : memref<1x8x16x8xf32, #tpu.memory_space<vmem>>, vector<1x8x16x8xf32>,
    %c0_91 = arith.constant 0 : index
    %c0_92 = arith.constant 0 : index
    %c0_93 = arith.constant 0 : index
    %c0_94 = arith.constant 0 : index
    %69 = vector.load %arg7[%c0_91, %c0_92, %c0_93, %c0_94] : memref<1x8x16x8xf32, #tpu.memory_space<vmem>>, vector<1x8x16x8xf32>
    %c0_95 = arith.constant 0 : index
    %c0_96 = arith.constant 0 : index
    %c0_97 = arith.constant 0 : index
    %c0_98 = arith.constant 0 : index
    %70 = vector.load %arg4[%c0_95, %c0_96, %c0_97, %c0_98] : memref<1x8x16x8xf32, #tpu.memory_space<vmem>>, vector<1x8x16x8xf32>
    tpu.vector_store %arg4[%c0_95, %c0_96, %c0_97, %c0_98], %69 {strides = array<i32>} : memref<1x8x16x8xf32, #tpu.memory_space<vmem>>, vector<1x8x16x8xf32>,
    %cst_99 = arith.constant dense<0.000000e+00> : vector<8xf32>
    %71 = vector.multi_reduction <add>, %69, %cst_99 [0, 1, 2] : vector<1x8x16x8xf32> to vector<8xf32>
    %72 = vector.shape_cast %71 : vector<8xf32> to vector<1x1x1x8xf32>
    %c0_100 = arith.constant 0 : index
    %c0_101 = arith.constant 0 : index
    %c0_102 = arith.constant 0 : index
    %c0_103 = arith.constant 0 : index
    %73 = vector.load %arg5[%c0_100, %c0_101, %c0_102, %c0_103] : memref<1x1x1x8xf32, #tpu.memory_space<vmem>>, vector<1x1x1x8xf32>
    tpu.vector_store %arg5[%c0_100, %c0_101, %c0_102, %c0_103], %72 {strides = array<i32>} : memref<1x1x1x8xf32, #tpu.memory_space<vmem>>, vector<1x1x1x8xf32>,
    %74 = arith.mulf %69, %69 : vector<1x8x16x8xf32>
    %cst_104 = arith.constant dense<0.000000e+00> : vector<8xf32>
    %75 = vector.multi_reduction <add>, %74, %cst_104 [0, 1, 2] : vector<1x8x16x8xf32> to vector<8xf32>
    %76 = vector.shape_cast %75 : vector<8xf32> to vector<1x1x1x8xf32>
    %c0_105 = arith.constant 0 : index
    %c0_106 = arith.constant 0 : index
    %c0_107 = arith.constant 0 : index
    %c0_108 = arith.constant 0 : index
    %77 = vector.load %arg6[%c0_105, %c0_106, %c0_107, %c0_108] : memref<1x1x1x8xf32, #tpu.memory_space<vmem>>, vector<1x1x1x8xf32>
    tpu.vector_store %arg6[%c0_105, %c0_106, %c0_107, %c0_108], %76 {strides = array<i32>} : memref<1x1x1x8xf32, #tpu.memory_space<vmem>>, vector<1x1x1x8xf32>,
    return
  }
  func.func @transform_0(%arg0: i32, %arg1: i32) -> (i32, i32, i32, i32) {
    %c0_i32 = arith.constant 0 : i32
    %c0_i32_0 = arith.constant 0 : i32
    %c0_i32_1 = arith.constant 0 : i32
    %c0_i32_2 = arith.constant 0 : i32
    return %arg0, %c0_i32, %c0_i32_0, %c0_i32_1 : i32, i32, i32, i32
  }
  func.func @transform_1(%arg0: i32, %arg1: i32) -> (i32, i32, i32, i32) {
    %c0_i32 = arith.constant 0 : i32
    %c0_i32_0 = arith.constant 0 : i32
    %c0_i32_1 = arith.constant 0 : i32
    %c0_i32_2 = arith.constant 0 : i32
    %c0_i32_3 = arith.constant 0 : i32
    return %c0_i32, %c0_i32_0, %c0_i32_1, %c0_i32_2 : i32, i32, i32, i32
  }
  func.func @transform_2(%arg0: i32, %arg1: i32) -> (i32, i32, i32, i32) {
    %c0_i32 = arith.constant 0 : i32
    %c0_i32_0 = arith.constant 0 : i32
    %c0_i32_1 = arith.constant 0 : i32
    return %arg0, %arg1, %c0_i32, %c0_i32_0 : i32, i32, i32, i32
  }
  func.func @transform_3(%arg0: i32, %arg1: i32) -> (i32, i32, i32, i32) {
    %c0_i32 = arith.constant 0 : i32
    %c0_i32_0 = arith.constant 0 : i32
    %c0_i32_1 = arith.constant 0 : i32
    return %arg0, %arg1, %c0_i32, %c0_i32_0 : i32, i32, i32, i32
  }
  func.func @transform_4(%arg0: i32, %arg1: i32) -> (i32, i32, i32, i32) {
    %c0_i32 = arith.constant 0 : i32
    %c0_i32_0 = arith.constant 0 : i32
    %c0_i32_1 = arith.constant 0 : i32
    return %arg0, %arg1, %c0_i32, %c0_i32_0 : i32, i32, i32, i32
  }
}

module attributes {stable_mosaic.version = 11 : i64} {
  func.func @bn_relu_kernel(%arg0: i32, %arg1: memref<32x128xf32, #tpu.memory_space<vmem>>, %arg2: memref<1x128xf32, #tpu.memory_space<vmem>>, %arg3: memref<1x128xf32, #tpu.memory_space<vmem>>, %arg4: memref<32x128xf32, #tpu.memory_space<vmem>>) attributes {dimension_semantics = [#tpu.dimension_semantics<parallel>], iteration_bounds = array<i64: 1>, scalar_prefetch = 0 : i64, scratch_operands = 0 : i64, tpu.core_type = #tpu.core_type<tc>, window_params = [{transform_indices = @transform_0, window_bounds = array<i64: 32, 128>}, {pipeline_mode = #tpu.pipeline_mode<synchronous>, transform_indices = @transform_1, window_bounds = array<i64: 1, 128>}, {pipeline_mode = #tpu.pipeline_mode<synchronous>, transform_indices = @transform_2, window_bounds = array<i64: 1, 128>}, {transform_indices = @transform_3, window_bounds = array<i64: 32, 128>}]} {
    %c0 = arith.constant 0 : index
    %c0_0 = arith.constant 0 : index
    %0 = vector.load %arg1[%c0, %c0_0] : memref<32x128xf32, #tpu.memory_space<vmem>>, vector<32x128xf32>
    %c0_1 = arith.constant 0 : index
    %c0_2 = arith.constant 0 : index
    %1 = vector.load %arg2[%c0_1, %c0_2] : memref<1x128xf32, #tpu.memory_space<vmem>>, vector<1x128xf32>
    %2 = vector.broadcast %1 : vector<1x128xf32> to vector<32x128xf32>
    %3 = arith.mulf %0, %2 : vector<32x128xf32>
    %c0_3 = arith.constant 0 : index
    %c0_4 = arith.constant 0 : index
    %4 = vector.load %arg3[%c0_3, %c0_4] : memref<1x128xf32, #tpu.memory_space<vmem>>, vector<1x128xf32>
    %5 = vector.broadcast %4 : vector<1x128xf32> to vector<32x128xf32>
    %6 = arith.addf %3, %5 : vector<32x128xf32>
    %cst = arith.constant 0.000000e+00 : f32
    %7 = vector.broadcast %cst : f32 to vector<32x128xf32>
    %8 = arith.maximumf %6, %7 : vector<32x128xf32>
    %c0_5 = arith.constant 0 : index
    %c0_6 = arith.constant 0 : index
    %9 = vector.load %arg4[%c0_5, %c0_6] : memref<32x128xf32, #tpu.memory_space<vmem>>, vector<32x128xf32>
    tpu.vector_store %arg4[%c0_5, %c0_6], %8 {strides = array<i32>} : memref<32x128xf32, #tpu.memory_space<vmem>>, vector<32x128xf32>,
    return
  }
  func.func @transform_0(%arg0: i32) -> (i32, i32) {
    %c0_i32 = arith.constant 0 : i32
    %c0_i32_0 = arith.constant 0 : i32
    return %arg0, %c0_i32 : i32, i32
  }
  func.func @transform_1(%arg0: i32) -> (i32, i32) {
    %c0_i32 = arith.constant 0 : i32
    %c0_i32_0 = arith.constant 0 : i32
    %c0_i32_1 = arith.constant 0 : i32
    return %c0_i32, %c0_i32_0 : i32, i32
  }
  func.func @transform_2(%arg0: i32) -> (i32, i32) {
    %c0_i32 = arith.constant 0 : i32
    %c0_i32_0 = arith.constant 0 : i32
    %c0_i32_1 = arith.constant 0 : i32
    return %c0_i32, %c0_i32_0 : i32, i32
  }
  func.func @transform_3(%arg0: i32) -> (i32, i32) {
    %c0_i32 = arith.constant 0 : i32
    %c0_i32_0 = arith.constant 0 : i32
    return %arg0, %c0_i32 : i32, i32
  }
}

</mosaic_0001>

<bundles_post_ra>
// kernel: tile.18
= control target key start
LH: loop header
LB: loop body
LE: loop exit
PB: predicated region body
PF: predicated region fallthrough
CT: control target
= control target key end

     0   :  { %s28_s0 = inlined_call_operand.vmem [shape: f32[8], index: 0, kind: input, shape index: {}]   ;;  %s29_s1 = inlined_call_operand.vmem [shape: f32[16,8], index: 1, kind: output, shape index: {}]  }
   0x1   :  { %v4_v0 = vld [vmem:[%s28_s0] ss:$0 sm:$0xff] }
   0x2   :  { %5 = vst [vmem:[%s29_s1] sm:$0xff] %v4_v0  ;;  %8 = vst [vmem:[%s29_s1 + $0x8] sm:$0xff] %v4_v0 }

// kernel: tile.19
= control target key start
LH: loop header
LB: loop body
LE: loop exit
PB: predicated region body
PF: predicated region fallthrough
CT: control target
= control target key end

     0   :  { %s131_s10 = smov 120   ;;  %s132_s11 = smov 104   ;;  %vm3_vm0 = vcmask 64512   ;;  %vm9_vm1 = vcmask 1048512   ;;  %vm15_vm2 = vcmask 982912   ;;  %vm21_vm3 = vcmask 917312   ;;  %s207_s0 = inlined_call_operand.vmem [shape: f32[16,8], index: 0, kind: input, shape index: {}]   ;;  %s208_s1 = inlined_call_operand.vmem [shape: f32[1,128], index: 1, kind: output, shape index: {}]  }
   0x1   :  { %v101_v0 = vld [vmem:[%s207_s0 + $0xf] sm:$0x1]   ;;  %v103_v1 = vld [vmem:[%s207_s0 + $0xd] sm:$0x1]   ;;  %v102_v2 = vld [vmem:[%s207_s0 + $0xe] sm:$0x1]  }
   0x2   :  { %7 = vrot.lane.b32.xlu0 %v101_v0, %s131_s10  ;;  %19 = vrot.lane.b32.xlu1 %v103_v1, %s132_s11  ;;  %v104_v3 = vld [vmem:[%s207_s0 + $0xc] sm:$0x1]   ;;  %s133_s16 = smov 112   ;;  %s134_s17 = smov 96   ;;  %v105_v4 = vld [vmem:[%s207_s0 + $0xb] sm:$0x1]  }
   0x3   :  { %v106_v5 = vld [vmem:[%s207_s0 + $0xa] sm:$0x1]   ;;  %v2_v6 = vld [vmem:[%s207_s0] sm:$0x1]   ;;  %s135_s24 = smov 88   ;;  %s136_s25 = smov 80  }
   0x4   :  { %4 = vst.msk [vmem:[#allocation0] sm:$0x1] %vm3_vm0, %v2_v6   ;;  %v107_v7 = vld [vmem:[%s207_s0 + $0x9] sm:$0x1]   ;;  %v108_v8 = vld [vmem:[%s207_s0 + $0x8] sm:$0x1]  }
   0x5   :  { %s137_s30 = smov 72   ;;  %s138_s2 = smov 64   ;;  %v109_v9 = vld [vmem:[%s207_s0 + $0x7] sm:$0x1]   ;;  %v110_v10 = vld [vmem:[%s207_s0 + $0x6] sm:$0x1]  }
   0x6   :  { %13 = vrot.lane.b32.xlu0 %v102_v2, %s133_s16  ;;  %25 = vrot.lane.b32.xlu1 %v104_v3, %s134_s17  ;;  %s139_s7 = smov 56   ;;  %s140_s8 = smov 48   ;;  %v111_v11 = vld [vmem:[%s207_s0 + $0x5] sm:$0x1]   ;;  %v112_v12 = vld [vmem:[%s207_s0 + $0x4] sm:$0x1]  }
   0x7   :  { %s141_s13 = smov 40   ;;  %s142_s14 = smov 32   ;;  %v113_v13 = vld [vmem:[%s207_s0 + $0x3] sm:$0x1]   ;;  %v114_v14 = vld [vmem:[%s207_s0 + $0x2] sm:$0x1]  }
   0x8   :  { %s143_s19 = smov 24   ;;  %s144_s20 = smov 16   ;;  %v115_v15 = vld [vmem:[%s207_s0 + $0x1] sm:$0x1]   ;;  %vm27_vm4 = vcmask 851712   ;;  %vm33_vm5 = vcmask 786112  }
   0x9   :  { %s145_s0 = smov 8   ;;  %vm39_vm6 = vcmask 720512   ;;  %vm45_vm7 = vcmask 654912   ;;  %vm51_vm8 = vcmask 589312   ;;  %vm57_vm9 = vcmask 523712  }
   0xa   :  { %31 = vrot.lane.b32.xlu0 %v105_v4, %s135_s24  ;;  %37 = vrot.lane.b32.xlu1 %v106_v5, %s136_s25  ;;  %vm63_vm10 = vcmask 458112   ;;  %vm69_vm11 = vcmask 392512   ;;  %vm75_vm12 = vcmask 326912   ;;  %vm81_vm13 = vcmask 261312  }
   0xb   :  { %vm87_vm14 = vcmask 195712   ;;  %vm93_vm15 = vcmask 130112  }
   0xe   :  { %43 = vrot.lane.b32.xlu0 %v107_v7, %s137_s30  ;;  %49 = vrot.lane.b32.xlu1 %v108_v8, %s138_s2 }
  0x12   :  { %55 = vrot.lane.b32.xlu0 %v109_v9, %s139_s7  ;;  %61 = vrot.lane.b32.xlu1 %v110_v10, %s140_s8 }
  0x16   :  { %67 = vrot.lane.b32.xlu0 %v111_v11, %s141_s13  ;;  %73 = vrot.lane.b32.xlu1 %v112_v12, %s142_s14 }
  0x1a   :  { %79 = vrot.lane.b32.xlu0 %v113_v13, %s143_s19  ;;  %85 = vrot.lane.b32.xlu1 %v114_v14, %s144_s20 }
  0x1e   :  { %91 = vrot.lane.b32.xlu0 %v115_v15, %s145_s0 }
  0x74   :  { %v8_v16 = vpop.permute.xlu0 %7   ;;  %v20_v17 = vpop.permute.xlu1 %19  }
  0x75   :  { %10 = vst.msk [vmem:[#allocation0] sm:$0x1] %vm9_vm1, %v8_v16  }
  0x78   :  { %v14_v18 = vpop.permute.xlu0 %13   ;;  %v26_v19 = vpop.permute.xlu1 %25  }
  0x79   :  { %16 = vst.msk [vmem:[#allocation0] sm:$0x1] %vm15_vm2, %v14_v18  }
  0x7a   :  { %22 = vst.msk [vmem:[#allocation0] sm:$0x1] %vm21_vm3, %v20_v17  }
  0x7b   :  { %28 = vst.msk [vmem:[#allocation0] sm:$0x1] %vm27_vm4, %v26_v19  }
  0x7c   :  { %v32_v20 = vpop.permute.xlu0 %31   ;;  %v38_v21 = vpop.permute.xlu1 %37  }
  0x7d   :  { %34 = vst.msk [vmem:[#allocation0] sm:$0x1] %vm33_vm5, %v32_v20  }
  0x7e   :  { %40 = vst.msk [vmem:[#allocation0] sm:$0x1] %vm39_vm6, %v38_v21  }
  0x80   :  { %v44_v22 = vpop.permute.xlu0 %43   ;;  %v50_v23 = vpop.permute.xlu1 %49  }
  0x81   :  { %46 = vst.msk [vmem:[#allocation0] sm:$0x1] %vm45_vm7, %v44_v22  }
  0x82   :  { %52 = vst.msk [vmem:[#allocation0] sm:$0x1] %vm51_vm8, %v50_v23  }
  0x84   :  { %v56_v24 = vpop.permute.xlu0 %55   ;;  %v62_v25 = vpop.permute.xlu1 %61  }
  0x85   :  { %58 = vst.msk [vmem:[#allocation0] sm:$0x1] %vm57_vm9, %v56_v24  }
  0x86   :  { %64 = vst.msk [vmem:[#allocation0] sm:$0x1] %vm63_vm10, %v62_v25  }
  0x88   :  { %v68_v26 = vpop.permute.xlu0 %67   ;;  %v74_v27 = vpop.permute.xlu1 %73  }
  0x89   :  { %70 = vst.msk [vmem:[#allocation0] sm:$0x1] %vm69_vm11, %v68_v26  }
  0x8a   :  { %76 = vst.msk [vmem:[#allocation0] sm:$0x1] %vm75_vm12, %v74_v27  }
  0x8c   :  { %v80_v28 = vpop.permute.xlu0 %79   ;;  %v86_v29 = vpop.permute.xlu1 %85  }
  0x8d   :  { %82 = vst.msk [vmem:[#allocation0] sm:$0x1] %vm81_vm13, %v80_v28  }
  0x8e   :  { %88 = vst.msk [vmem:[#allocation0] sm:$0x1] %vm87_vm14, %v86_v29  }
  0x90   :  { %v92_v30 = vpop.permute.xlu0 %91  }
  0x91   :  { %94 = vst.msk [vmem:[#allocation0] sm:$0x1] %vm93_vm15, %v92_v30  }
  0x98   :  { %v98_v31 = vld [vmem:[#allocation0] sm:$0x1] }
  0x99   :  { %100 = vst [vmem:[%s208_s1] sm:$0x1] %v98_v31 }

// kernel: basic_conv.3
= control target key start
LH: loop header
LB: loop body
LE: loop exit
PB: predicated region body
PF: predicated region fallthrough
CT: control target
= control target key end

     0   :  { %s104_s0 = inlined_call_operand.vmem [shape: f32[32,128], index: 0, kind: input, shape index: {}]   ;;  %s105_s1 = inlined_call_operand.vmem [shape: f32[1,128], index: 1, kind: input, shape index: {}]   ;;  %s106_s2 = inlined_call_operand.vmem [shape: f32[1,128], index: 2, kind: input, shape index: {}]   ;;  %s107_s3 = inlined_call_operand.vmem [shape: f32[32,128], index: 3, kind: output, shape index: {}]  }
   0x1   :  { %v14_v0 = vld [vmem:[%s104_s0] sm:$0xff]  ;;  %v15_v4 = vld [vmem:[%s104_s0 + $0x8] sm:$0xff]  ;;  %v16_v5 = vld [vmem:[%s104_s0 + $0x10] sm:$0xff] }
   0x2   :  { %v52_v1 = vld [vmem:[%s105_s1] ss:$0 sm:$0xff]  ;;  %v17_v6 = vld [vmem:[%s104_s0 + $0x18] sm:$0xff] }
   0x3   :  { %v53_v2 = vld [vmem:[%s106_s2] ss:$0 sm:$0xff]  ;;  %v25_v3 = vmul.f32 %v52_v1, %v14_v0  ;;  %v26_v7 = vmul.f32 %v52_v1, %v15_v4  ;;  %v27_v8 = vmul.f32 %v52_v1, %v16_v5  ;;  %v28_v9 = vmul.f32 %v52_v1, %v17_v6 }
   0x5   :  { %v36_v10 = vadd.f32 %v53_v2, %v25_v3  ;;  %v37_v11 = vadd.f32 %v53_v2, %v26_v7  ;;  %v38_v12 = vadd.f32 %v53_v2, %v27_v8  ;;  %v39_v13 = vadd.f32 %v53_v2, %v28_v9 }
   0x7   :  { %v40_v14 = vmax.f32 %v36_v10, 0.0  ;;  %v41_v15 = vmax.f32 %v37_v11, 0.0  ;;  %v42_v16 = vmax.f32 %v38_v12, 0.0  ;;  %v43_v17 = vmax.f32 %v39_v13, 0.0 }
   0x9   :  { %44 = vst [vmem:[%s107_s3] sm:$0xff] %v40_v14  ;;  %45 = vst [vmem:[%s107_s3 + $0x8] sm:$0xff] %v41_v15 }
   0xa   :  { %46 = vst [vmem:[%s107_s3 + $0x10] sm:$0xff] %v42_v16  ;;  %47 = vst [vmem:[%s107_s3 + $0x18] sm:$0xff] %v43_v17 }

// kernel: basic_conv.2
= control target key start
LH: loop header
LB: loop body
LE: loop exit
PB: predicated region body
PF: predicated region fallthrough
CT: control target
= control target key end

     0   :  { %s3302_s15 = smov 0   ;;  %s3304_s16 = smov 0   ;;  %s4198_s0 = inlined_call_operand.vmem [shape: f32[2,18,18,4], index: 0, kind: input, shape index: {}]   ;;  %s4199_s1 = inlined_call_operand.vmem [shape: f32[3,3,4,8], index: 1, kind: input, shape index: {}]   ;;  %s4200_s2 = inlined_call_operand.vmem [shape: f32[2,16,16,8], index: 2, kind: output, shape index: {0}]   ;;  %s4201_s3 = inlined_call_operand.vmem [shape: f32[2,2,1,8], index: 3, kind: output, shape index: {1}]   ;;  %s4202_s4 = inlined_call_operand.vmem [shape: f32[2,2,1,8], index: 4, kind: output, shape index: {2}]  }
   0x1   :  { %s3306_s17 = smov 0   ;;  %s3308_s18 = smov 0  }
   0x2   :  { %s3310_s19 = smov 0  }
   0x3 LB: > { %s24_s20 = sadd.s32 1, %s3266_s17  ;;  %s27_s21 = sadd.s32 1, %s3270_s18  ;;  %s3274_s19 = sphi %s3310_s19, %s15_s19   ;;  %s3270_s18 = sphi %s3308_s18, %s4209_s18   ;;  %s3266_s17 = sphi %s3306_s17, %s4208_s17   ;;  %s3262_s16 = sphi %s3304_s16, %s4207_s16   ;;  %s3258_s15 = sphi %s3302_s15, %s4206_s15  }
   0x4   : > { %p25_p0 = scmp.ge.s32.totalorder %s24_s20, 2  ;;  %p2640_p1 = scmp.ge.s32.totalorder %s3274_s19, 1 }
   0x5   : > { %p185_p2 = scmp.lt.s32.totalorder %s3274_s19, 5 }
   0x6   : > { %s4211_s20 = smov (%p25_p0, %s24_s20), 0  ;;  %s4213_s21 = smov (!%p25_p0, %s27_s21), %s3270_s18 }
   0x7   : > { %p186_p3 = pnand %p2640_p1, %p185_p2  ;;  %p29_p4 = scmp.ge.s32.totalorder %s4213_s21, 2 }
   0x8   : > { %v293_v0 = vld [vmem:[%s4199_s1] sm:$0xf] (!%p186_p3)  ;;  %vm384_vm0 = vcmask (!%p186_p3), 1043456   ;;  %p230_p5 = scmp.lt.s32.totalorder (!%p186_p3), %s3262_s16, 1  ;;  %v294_v1 = vld [vmem:[%s4199_s1 + $0x4] sm:$0xf] (!%p186_p3) }
   0x9   : > { %s4215_s21 = smov (%p29_p4, %s4213_s21), 0  ;;  %189 = sbr.rel (%p186_p3) target bundleno = 417 (0x1a1), region = 28 }
   0xa   : > { %3192 = vmatprep.subr.msk.mxu1 (!%p186_p3), %vm384_vm0, %v293_v0  ;;  %2958 = vmatprep.subr.msk.mxu0 (!%p186_p3), %vm384_vm0, %v293_v0  ;;  %v295_v2 = vld [vmem:[%s4199_s1 + $0x8] sm:$0xf] (!%p186_p3)  ;;  %s2649_s28 = smul.u32 (!%p186_p3), 192, %s3258_s15  ;;  %vm335_vm1 = vcmask (!%p186_p3), 31744   ;;  %v3376_v8 = vld [vmem:[%s4199_s1 + $0xc] sm:$0xf] (!%p186_p3) }
   0xb   : > { %3193 = vmatpush3.msk.msra.mxu1 (!%p186_p3), %vm384_vm0, %v293_v0  ;;  %2959 = vmatpush3.msk.msra.mxu0 (!%p186_p3), %vm384_vm0, %v293_v0  ;;  %v3393_v11 = vld [vmem:[%s4199_s1 + $0x10] sm:$0xf] (!%p186_p3)  ;;  %vm589_vm2 = vcmask (!%p186_p3), 1046528   ;;  %vm858_vm3 = vcmask (!%p186_p3), 1045504   ;;  %v3481_v50 = vld [vmem:[%s4199_s1 + $0x14] sm:$0xf] (!%p186_p3) }
   0xc   : > { %2984 = vmatprep.subr.msk.mxu1 (!%p186_p3), %vm384_vm0, %v294_v1  ;;  %3010 = vmatprep.subr.msk.mxu0 (!%p186_p3), %vm384_vm0, %v295_v2  ;;  %v3511_v59 = vld [vmem:[%s4199_s1 + $0x18] sm:$0xf] (!%p186_p3)  ;;  %vm302_vm4 = vcmask (!%p186_p3), 64512   ;;  %s2642_s27 = sshll.u32 (!%p186_p3), %s3258_s15, 3  ;;  %p248_p7 = scmp.lt.s32.totalorder (!%p186_p3), %s3258_s15, 1  ;;  %vm2406_vm5 = vcmask (!%p186_p3), 57344  }
   0xd   : > { %p4053_p6 = scmp.lt.s32.totalorder (!%p186_p3), %s2642_s27, 15 }
  0x10   : > { %s4217_s16 = smov (!%p230_p5, %s3262_s16), 1  ;;  %s4219_s27 = smov (!%p4053_p6, %s2642_s27), 15 }
  0x11   : > { %s3194_s29 = smul.u32 432, %s4217_s16  ;;  %s2644_s30 = sshll.u32 %s4217_s16, 5 }
  0x12   : > { %s4221_s15 = smov (!%p248_p7, %s3258_s15), 1  ;;  %s2646_s10 = sshll.u32 %s4217_s16, 1 }
  0x13   : > { %s234_s6 = scalar_lea.vmem %s4198_s0, %s3194_s29  ;;  %s2643_s29 = sshll.u32 %s4219_s27, 1 }
  0x14   : > { %s3356_s7 = scalar_lea.vmem %s234_s6, %s2649_s28  ;;  %s242_s5 = sadd.s32 %s2644_s30, %s2643_s29 }
  0x15   : > { %v3359_v3 = vld [vmem:[%s3356_s7 + $0x60] sm:$0xff]  ;;  %v3362_v4 = vld [vmem:[%s3356_s7 + $0x68] sm:$0xff]  ;;  %v3365_v5 = vld [vmem:[%s3356_s7 + $0x78] sm:$0xff]  ;;  %s2645_s6 = sshll.u32 %s242_s5, 3  ;;  %s251_s11 = sadd.s32 %s2646_s10, %s4221_s15 }
  0x16   : > { %2972 = vmatprep.mubr.msk.f32.mxu1 %vm335_vm1, %v3359_v3  ;;  %v263_v6 = vld [vmem:[%s3356_s7] sm:$0xff]  ;;  %v3371_v7 = vld [vmem:[%s3356_s7 + $0x8] sm:$0xff]  ;;  %v3388_v10 = vld [vmem:[%s3356_s7 + $0x18] sm:$0xff]  ;;  %v610_v53 = vrot.slane %v3359_v3, 1  ;;  %v611_v54 = vrot.slane %v3362_v4, 1  ;;  %s4084_s9 = scalar_lea.vmem %s4200_s2, %s2645_s6  ;;  %s252_s14 = scalar_lea.vmem %s4201_s3, %s251_s11 }
  0x17   : > { %2973 = vmatmul.mubr.msk.f32.vlgmr.msra.gmra.mrb[0].mxu1 %vm335_vm1, %v3362_v4  ;;  %2960 = vmatprep.mubr.msk.f32.mxu0 %vm335_vm1, %v263_v6  ;;  %v3385_v9 = vld [vmem:[%s3356_s7 + $0x80] sm:$0xff]  ;;  %v3398_v12 = vld [vmem:[%s3356_s7 + $0x90] sm:$0xff]  ;;  %v3418_v15 = vld [vmem:[%s3356_s7 + $0x98] sm:$0xff]  ;;  %v590_v16 = vrot.slane %v263_v6, 1  ;;  %v591_v17 = vrot.slane %v3371_v7, 1  ;;  %v859_v21 = vrot.slane %v263_v6, 2  ;;  %s259_s24 = scalar_lea.vmem %s4202_s4, %s251_s11 }
  0x18   : > { %2985 = vmatpush3.msk.msra.mxu1 %vm384_vm0, %v294_v1  ;;  %2975 = vmatprep.mubr.msk.f32.mxu1 %vm335_vm1, %v3365_v5  ;;  %v3405_v13 = vld [vmem:[%s3356_s7 + $0x20] sm:$0xff]  ;;  %v3411_v14 = vld [vmem:[%s3356_s7 + $0x30] sm:$0xff]  ;;  %v3424_v18 = vld [vmem:[%s3356_s7 + $0xa8] sm:$0xff]  ;;  %v860_v22 = vrot.slane %v3371_v7, 2  ;;  %v595_v27 = vrot.slane %v3388_v10, 1  ;;  %v864_v31 = vrot.slane %v3388_v10, 2 }
  0x19   : > { %2961 = vmatmul.mubr.msk.f32.vlgmr.msra.gmra.mrb[0].mxu0 %vm335_vm1, %v3371_v7  ;;  %3036 = vmatprep.subr.msk.mxu1 %vm384_vm0, %v3376_v8  ;;  %v265_v19 = vld [vmem:[%s3356_s7 + $0x10] sm:$0x3]  ;;  %v3430_v20 = vld [vmem:[%s3356_s7 + $0x38] sm:$0xff]  ;;  %v3436_v23 = vld [vmem:[%s3356_s7 + $0x48] sm:$0xff]  ;;  %v596_v28 = vrot.slane %v3405_v13, 1  ;;  %v592_v29 = vsel %vm589_vm2, %v590_v16, %v591_v17  ;;  %v865_v32 = vrot.slane %v3405_v13, 2 }
  0x1a   : > { %2963 = vmatprep.mubr.msk.f32.mxu0 %vm335_vm1, %v3388_v10  ;;  %3011 = vmatpush3.msk.msra.mxu0 %vm384_vm0, %v295_v2  ;;  %v3441_v24 = vld [vmem:[%s3356_s7 + $0xb0] sm:$0xff]  ;;  %v593_v25 = vrot.slane %v265_v19, 1  ;;  %v268_v26 = vld [vmem:[%s3356_s7 + $0x28] sm:$0x3]  ;;  %v271_v30 = vld [vmem:[%s3356_s7 + $0x40] sm:$0x3]  ;;  %v861_v38 = vsel %vm858_vm3, %v859_v21, %v860_v22 }
  0x1b   : > { %2976 = vmatmul.mubr.msk.f32.gmra.mrb[2].mxu1 %vm335_vm1, %v3385_v9  ;;  %3062 = vmatprep.subr.msk.mxu0 %vm384_vm0, %v3393_v11  ;;  %v3455_v33 = vld [vmem:[%s3356_s7 + $0x50] sm:$0xff]  ;;  %v600_v34 = vrot.slane %v3411_v14, 1  ;;  %v862_v35 = vrot.slane %v265_v19, 2  ;;  %v598_v36 = vrot.slane %v268_v26, 1  ;;  %v601_v37 = vrot.slane %v3430_v20, 1  ;;  %v3528_v1 = vld [vmem:[%s3356_s7 + $0xc0] sm:$0xff] }
  0x1c   : > { %2978 = vmatprep.mubr.msk.f32.mxu1 %vm335_vm1, %v3398_v12  ;;  %v869_v39 = vrot.slane %v3411_v14, 2  ;;  %v594_v40 = vsel %vm589_vm2, %v591_v17, %v593_v25  ;;  %v603_v41 = vrot.slane %v271_v30, 1  ;;  %v605_v42 = vrot.slane %v3436_v23, 1  ;;  %v3473_v45 = vld [vmem:[%s3356_s7 + $0x58] sm:$0x3]  ;;  %v3531_v2 = vld [vmem:[%s3356_s7 + $0xc8] sm:$0xff] }
  0x1d   : > { %2964 = vmatmul.mubr.msk.f32.gmra.mrb[2].mxu0 %vm335_vm1, %v3405_v13  ;;  %v606_v43 = vrot.slane %v3455_v33, 1  ;;  %v3470_v44 = vsel %vm589_vm2, %v595_v27, %v596_v28  ;;  %v867_v46 = vrot.slane %v268_v26, 2  ;;  %v870_v47 = vrot.slane %v3430_v20, 2  ;;  %v289_v60 = vld [vmem:[%s3356_s7 + $0xd0] sm:$0x3]  ;;  %v3534_v6 = vld [vmem:[%s3356_s7 + $0xd8] sm:$0xff] }
  0x1e   : > { %2966 = vmatprep.mubr.msk.f32.mxu0 %vm335_vm1, %v3411_v14  ;;  %v872_v48 = vrot.slane %v271_v30, 2  ;;  %v863_v49 = vsel %vm858_vm3, %v860_v22, %v862_v35  ;;  %v3485_v51 = vsel %vm589_vm2, %v600_v34, %v601_v37  ;;  %v3488_v52 = vsel %vm858_vm3, %v864_v31, %v865_v32  ;;  %v292_v19 = vld [vmem:[%s3356_s7 + $0xe8] sm:$0x3]  ;;  %v3552_v26 = vld [vmem:[%s3356_s7 + $0xe0] sm:$0xff]  ;;  %v277_v31 = vld [vmem:[%s3356_s7 + $0x70] sm:$0x3] }
  0x1f   : > { %2979 = vmatmul.mubr.msk.f32.gmra.mrb[4].mxu1 %vm335_vm1, %v3418_v15  ;;  %v3497_v55 = vsel %vm589_vm2, %v596_v28, %v598_v36  ;;  %v3500_v56 = vsel %vm589_vm2, %v601_v37, %v603_v41  ;;  %v3505_v57 = vsel %vm589_vm2, %v605_v42, %v606_v43  ;;  %v608_v58 = vrot.slane %v3473_v45, 1 }
  0x20   : > { %2981 = vmatprep.mubr.msk.f32.mxu1 %vm335_vm1, %v3424_v18  ;;  %v3516_v61 = vsel %vm858_vm3, %v865_v32, %v867_v46  ;;  %v3519_v62 = vsel %vm858_vm3, %v869_v39, %v870_v47  ;;  %v3522_v63 = vsel %vm858_vm3, %v870_v47, %v872_v48  ;;  %v874_v0 = vrot.slane %v3436_v23, 2 }
  0x21   : > { %2967 = vmatmul.mubr.msk.f32.gmra.mrb[4].mxu0 %vm335_vm1, %v3430_v20  ;;  %v875_v7 = vrot.slane %v3455_v33, 2  ;;  %v4203_v16 = vrot.slane %v3531_v2, 1  ;;  %v1536_v17 = vrot.slane %v3531_v2, 2  ;;  %v877_v21 = vrot.slane %v3473_v45, 2 }
  0x22   : > { %2969 = vmatprep.mubr.msk.f32.mxu0 %vm335_vm1, %v3436_v23  ;;  %v1538_v22 = vrot.slane %v289_v60, 2  ;;  %v1943_v25 = vrot.slane %v3534_v6, 1  ;;  %v879_v27 = vrot.slane %v3359_v3, 2  ;;  %v1944_v30 = vrot.slane %v3552_v26, 1 }
  0x23   : > { %2982 = vmatmul.mubr.msk.f32.gmra.mrb[6].mxu1 %vm335_vm1, %v3441_v24  ;;  %v2149_v35 = vrot.slane %v3552_v26, 2  ;;  %v1946_v36 = vrot.slane %v292_v19, 1  ;;  %v3582_v39 = vsel %vm858_vm3, %v874_v0, %v875_v7  ;;  %v3276_v46 = vmov 0.0  }
  0x24   : > { %2986 = vmatprep.mubr.msk.f32.mxu1 %vm335_vm1, %v592_v29  ;;  %v2148_v29 = vrot.slane %v3534_v6, 2  ;;  %v3571_v34 = vsel %vm858_vm3, %v1536_v17, %v1538_v22  ;;  %v3577_v37 = vsel %vm589_vm2, %v1943_v25, %v1944_v30  ;;  %312 = vst.msk [vmem:[#allocation2 + $0x48] sm:$0xff] %vm302_vm4, %v3276_v46  ;;  %303 = vst.msk [vmem:[#allocation2] sm:$0xff] %vm302_vm4, %v3276_v46  ;;  %v613_v48 = vrot.slane %v277_v31, 1 }
  0x25   : > { %2970 = vmatmul.mubr.msk.f32.gmra.mrb[6].mxu0 %vm335_vm1, %v3455_v33  ;;  %v3586_v41 = vsel %vm589_vm2, %v1944_v30, %v1946_v36  ;;  %304 = vst.msk [vmem:[#allocation2 + $0x8] sm:$0xff] %vm302_vm4, %v3276_v46  ;;  %305 = vst.msk [vmem:[#allocation2 + $0x10] sm:$0xff] %vm302_vm4, %v3276_v46  ;;  %v3614_v47 = vsel %vm589_vm2, %v606_v43, %v608_v58  ;;  %v615_v45 = vrot.slane %v3365_v5, 1  ;;  %v616_v0 = vrot.slane %v3385_v9, 1  ;;  %v280_v43 = vld [vmem:[%s3356_s7 + $0x88] sm:$0x3] }
  0x26   : > { %3012 = vmatprep.mubr.msk.f32.mxu0 %vm335_vm1, %v861_v38  ;;  %v2151_v38 = vrot.slane %v292_v19, 2  ;;  %v3589_v42 = vsel %vm858_vm3, %v2148_v29, %v2149_v35  ;;  %306 = vst.msk [vmem:[#allocation2 + $0x18] sm:$0xff] %vm302_vm4, %v3276_v46  ;;  %307 = vst.msk [vmem:[#allocation2 + $0x20] sm:$0xff] %vm302_vm4, %v3276_v46  ;;  %v3634_v58 = vsel %vm858_vm3, %v875_v7, %v877_v21  ;;  %v885_v19 = vrot.slane %v3385_v9, 2 }
  0x27   : > { %2987 = vmatmul.mubr.msk.f32.vlgmr.msra.gmra.mrb[8].mxu1 %vm335_vm1, %v594_v40  ;;  %v880_v40 = vrot.slane %v3362_v4, 2  ;;  %308 = vst.msk [vmem:[#allocation2 + $0x28] sm:$0xff] %vm302_vm4, %v3276_v46  ;;  %309 = vst.msk [vmem:[#allocation2 + $0x30] sm:$0xff] %vm302_vm4, %v3276_v46  ;;  %v618_v7 = vrot.slane %v280_v43, 1  ;;  %v3651_v21 = vsel %vm589_vm2, %v615_v45, %v616_v0  ;;  %v620_v22 = vrot.slane %v3398_v12, 1 }
  0x28   : > { %3037 = vmatpush3.msk.msra.mxu1 %vm384_vm0, %v3376_v8  ;;  %2989 = vmatprep.mubr.msk.f32.mxu1 %vm335_vm1, %v3470_v44  ;;  %v1535_v8 = vrot.slane %v3528_v1, 2  ;;  %310 = vst.msk [vmem:[#allocation2 + $0x38] sm:$0xff] %vm302_vm4, %v3276_v46  ;;  %311 = vst.msk [vmem:[#allocation2 + $0x40] sm:$0xff] %vm302_vm4, %v3276_v46  ;;  %v621_v25 = vrot.slane %v3418_v15, 1  ;;  %v286_v45 = vld [vmem:[%s3356_s7 + $0xb8] sm:$0x3] }
  0x29   : > { %3013 = vmatmul.mubr.msk.f32.vlgmr.msra.gmra.mrb[8].mxu0 %vm335_vm1, %v863_v49  ;;  %3088 = vmatprep.subr.msk.mxu1 %vm384_vm0, %v3481_v50  ;;  %313 = vst.msk [vmem:[#allocation2 + $0x50] sm:$0xff] %vm302_vm4, %v3276_v46  ;;  %314 = vst.msk [vmem:[#allocation2 + $0x58] sm:$0xff] %vm302_vm4, %v3276_v46  ;;  %v3617_v49 = vsel %vm858_vm3, %v2149_v35, %v2151_v38  ;;  %v890_v35 = vrot.slane %v3418_v15, 2  ;;  %v3673_v36 = vsel %vm589_vm2, %v616_v0, %v618_v7 }
  0x2a   : > { %3063 = vmatpush3.msk.msra.mxu0 %vm384_vm0, %v3393_v11  ;;  %3015 = vmatprep.mubr.msk.f32.mxu0 %vm335_vm1, %v3488_v52  ;;  %v1333_v11 = vrot.slane %v289_v60, 1  ;;  %v3558_v28 = vsel %vm858_vm3, %v1535_v8, %v1536_v17  ;;  %315 = vst.msk [vmem:[#allocation2 + $0x60] sm:$0xff] %vm302_vm4, %v3276_v46  ;;  %316 = vst.msk [vmem:[#allocation2 + $0x68] sm:$0xff] %vm302_vm4, %v3276_v46  ;;  %v3624_v60 = vsel %vm589_vm2, %v610_v53, %v611_v54 }
  0x2b   : > { %2990 = vmatmul.mubr.msk.f32.gmra.mrb[10].mxu1 %vm335_vm1, %v3497_v55  ;;  %3114 = vmatprep.subr.msk.mxu0 %vm384_vm0, %v3511_v59  ;;  %317 = vst.msk [vmem:[#allocation2 + $0x70] sm:$0xff] %vm302_vm4, %v3276_v46  ;;  %318 = vst.msk [vmem:[#allocation2 + $0x78] sm:$0xff] %vm302_vm4, %v3276_v46  ;;  %v882_v8 = vrot.slane %v277_v31, 2  ;;  %v3639_v53 = vsel %vm858_vm3, %v879_v27, %v880_v40  ;;  %v884_v17 = vrot.slane %v3365_v5, 2  ;;  %v283_v27 = vld [vmem:[%s3356_s7 + $0xa0] sm:$0x3] }
  0x2c   : > { %2992 = vmatprep.mubr.msk.f32.mxu1 %vm335_vm1, %v3485_v51  ;;  %v3568_v32 = vsel %vm589_vm2, %v4203_v16, %v1333_v11  ;;  %v3648_v11 = vsel %vm589_vm2, %v611_v54, %v613_v48  ;;  %v887_v54 = vrot.slane %v280_v43, 2  ;;  %v889_v31 = vrot.slane %v3398_v12, 2 }
  0x2d   : > { %3016 = vmatmul.mubr.msk.f32.gmra.mrb[10].mxu0 %vm335_vm1, %v3516_v61  ;;  %v3661_v29 = vsel %vm858_vm3, %v880_v40, %v882_v8  ;;  %v3666_v30 = vsel %vm858_vm3, %v884_v17, %v885_v19  ;;  %v623_v38 = vrot.slane %v283_v27, 1  ;;  %v3676_v40 = vsel %vm589_vm2, %v620_v22, %v621_v25 }
  0x2e   : > { %3018 = vmatprep.mubr.msk.f32.mxu0 %vm335_vm1, %v3519_v62  ;;  %v625_v46 = vrot.slane %v3424_v18, 1  ;;  %v626_v48 = vrot.slane %v3441_v24, 1  ;;  %v3686_v43 = vsel %vm858_vm3, %v885_v19, %v887_v54  ;;  %v892_v0 = vrot.slane %v283_v27, 2 }
  0x2f   : > { %2993 = vmatmul.mubr.msk.f32.gmra.mrb[12].mxu1 %vm335_vm1, %v3500_v56  ;;  %v3691_v8 = vsel %vm858_vm3, %v889_v31, %v890_v35  ;;  %v894_v17 = vrot.slane %v3424_v18, 2  ;;  %v895_v7 = vrot.slane %v3441_v24, 2  ;;  %v3698_v22 = vsel %vm589_vm2, %v621_v25, %v623_v38  ;;  %v325_v38 = vld [vmem:[#allocation2 + $0x30] sm:$0xff] }
  0x30   : > { %2995 = vmatprep.mubr.msk.f32.mxu1 %vm335_vm1, %v3505_v57  ;;  %v628_v16 = vrot.slane %v286_v45, 1  ;;  %v3701_v19 = vsel %vm589_vm2, %v625_v46, %v626_v48  ;;  %v3708_v27 = vsel %vm858_vm3, %v890_v35, %v892_v0  ;;  %v897_v54 = vrot.slane %v286_v45, 2 }
  0x31   : > { %3019 = vmatmul.mubr.msk.f32.gmra.mrb[12].mxu0 %vm335_vm1, %v3522_v63  ;;  %v3713_v25 = vsel %vm858_vm3, %v894_v17, %v895_v7 }
  0x32   : > { %3021 = vmatprep.mubr.msk.f32.mxu0 %vm335_vm1, %v3582_v39  ;;  %v3718_v31 = vsel %vm589_vm2, %v626_v48, %v628_v16  ;;  %v3725_v35 = vsel %vm858_vm3, %v895_v7, %v897_v54  ;;  %v300_v16 = vld [vmem:[%s4199_s1 + $0x1c] sm:$0xf] }
  0x33   : > { %2996 = vmatmul.mubr.msk.f32.gmra.mrb[14].mxu1 %vm335_vm1, %v3614_v47 }
  0x34   : > { %2998 = vmatprep.mubr.msk.f32.mxu1 %vm335_vm1, %v3624_v60 }
  0x35   : > { %3022 = vmatmul.mubr.msk.f32.gmra.mrb[14].mxu0 %vm335_vm1, %v3634_v58 }
  0x36   : > { %3024 = vmatprep.mubr.msk.f32.mxu0 %vm335_vm1, %v3639_v53 }
  0x37   : > { %2999 = vmatmul.mubr.msk.f32.gmra.mrb[16].mxu1 %vm335_vm1, %v3648_v11 }
  0x38   : > { %3001 = vmatprep.mubr.msk.f32.mxu1 %vm335_vm1, %v3651_v21 }
  0x39   : > { %3025 = vmatmul.mubr.msk.f32.gmra.mrb[16].mxu0 %vm335_vm1, %v3661_v29 }
  0x3a   : > { %3027 = vmatprep.mubr.msk.f32.mxu0 %vm335_vm1, %v3666_v30 }
  0x3b   : > { %3002 = vmatmul.mubr.msk.f32.gmra.mrb[18].mxu1 %vm335_vm1, %v3673_v36 }
  0x3c   : > { %3004 = vmatprep.mubr.msk.f32.mxu1 %vm335_vm1, %v3676_v40 }
  0x3d   : > { %3028 = vmatmul.mubr.msk.f32.gmra.mrb[18].mxu0 %vm335_vm1, %v3686_v43 }
  0x3e   : > { %3030 = vmatprep.mubr.msk.f32.mxu0 %vm335_vm1, %v3691_v8 }
  0x3f   : > { %3005 = vmatmul.mubr.msk.f32.gmra.mrb[20].mxu1 %vm335_vm1, %v3698_v22 }
  0x40   : > { %3007 = vmatprep.mubr.msk.f32.mxu1 %vm335_vm1, %v3701_v19 }
  0x41   : > { %3031 = vmatmul.mubr.msk.f32.gmra.mrb[20].mxu0 %vm335_vm1, %v3708_v27 }
  0x42   : > { %3033 = vmatprep.mubr.msk.f32.mxu0 %vm335_vm1, %v3713_v25 }
  0x43   : > { %3008 = vmatmul.mubr.msk.f32.gmra.mrb[22].mxu1 %vm335_vm1, %v3718_v31 }
  0x44   : > { %3038 = vmatprep.mubr.msk.f32.mxu1 %vm335_vm1, %v3388_v10  ;;  %v301_v10 = vld [vmem:[%s4199_s1 + $0x20] sm:$0xf] }
  0x45   : > { %3034 = vmatmul.mubr.msk.f32.gmra.mrb[22].mxu0 %vm335_vm1, %v3725_v35 }
  0x46   : > { %3064 = vmatprep.mubr.msk.f32.mxu0 %vm335_vm1, %v3470_v44  ;;  %v4204_v44 = vrot.slane %v3531_v2, 1 }
  0x47   : > { %3039 = vmatmul.mubr.msk.f32.vlgmr.msra.gmra.mrb[24].mxu1 %vm335_vm1, %v3405_v13  ;;  %v1330_v13 = vrot.slane %v3528_v1, 1 }
  0x48   : > { %3089 = vmatpush3.msk.msra.mxu1 %vm384_vm0, %v3481_v50  ;;  %3041 = vmatprep.mubr.msk.f32.mxu1 %vm335_vm1, %v3411_v14 }
  0x49   : > { %3065 = vmatmul.mubr.msk.f32.vlgmr.msra.gmra.mrb[24].mxu0 %vm335_vm1, %v3497_v55  ;;  %3140 = vmatprep.subr.msk.mxu1 %vm384_vm0, %v300_v16  ;;  %v3801_v50 = vsel %vm589_vm2, %v1330_v13, %v4204_v44 }
  0x4a   : > { %3115 = vmatpush3.msk.msra.mxu0 %vm384_vm0, %v3511_v59  ;;  %3067 = vmatprep.mubr.msk.f32.mxu0 %vm335_vm1, %v3485_v51 }
  0x4b   : > { %3042 = vmatmul.mubr.msk.f32.gmra.mrb[26].mxu1 %vm335_vm1, %v3430_v20  ;;  %3166 = vmatprep.subr.msk.mxu0 %vm384_vm0, %v301_v10 }
  0x4c   : > { %3044 = vmatprep.mubr.msk.f32.mxu1 %vm335_vm1, %v3436_v23 }
  0x4d   : > { %3068 = vmatmul.mubr.msk.f32.gmra.mrb[26].mxu0 %vm335_vm1, %v3500_v56 }
  0x4e   : > { %3070 = vmatprep.mubr.msk.f32.mxu0 %vm335_vm1, %v3505_v57 }
  0x4f   : > { %3045 = vmatmul.mubr.msk.f32.gmra.mrb[28].mxu1 %vm335_vm1, %v3455_v33 }
  0x50   : > { %3047 = vmatprep.mubr.msk.f32.mxu1 %vm335_vm1, %v3359_v3 }
  0x51   : > { %3071 = vmatmul.mubr.msk.f32.gmra.mrb[28].mxu0 %vm335_vm1, %v3614_v47 }
  0x52   : > { %3073 = vmatprep.mubr.msk.f32.mxu0 %vm335_vm1, %v3624_v60 }
  0x53   : > { %3048 = vmatmul.mubr.msk.f32.gmra.mrb[30].mxu1 %vm335_vm1, %v3362_v4 }
  0x54   : > { %3050 = vmatprep.mubr.msk.f32.mxu1 %vm335_vm1, %v3365_v5 }
  0x55   : > { %3074 = vmatmul.mubr.msk.f32.gmra.mrb[30].mxu0 %vm335_vm1, %v3648_v11 }
  0x56   : > { %3076 = vmatprep.mubr.msk.f32.mxu0 %vm335_vm1, %v3651_v21 }
  0x57   : > { %3051 = vmatmul.mubr.msk.f32.gmra.mrb[32].mxu1 %vm335_vm1, %v3385_v9 }
  0x58   : > { %3053 = vmatprep.mubr.msk.f32.mxu1 %vm335_vm1, %v3398_v12 }
  0x59   : > { %3077 = vmatmul.mubr.msk.f32.gmra.mrb[32].mxu0 %vm335_vm1, %v3673_v36 }
  0x5a   : > { %3079 = vmatprep.mubr.msk.f32.mxu0 %vm335_vm1, %v3676_v40 }
  0x5b   : > { %3054 = vmatmul.mubr.msk.f32.gmra.mrb[34].mxu1 %vm335_vm1, %v3418_v15 }
  0x5c   : > { %3056 = vmatprep.mubr.msk.f32.mxu1 %vm335_vm1, %v3424_v18 }
  0x5d   : > { %3080 = vmatmul.mubr.msk.f32.gmra.mrb[34].mxu0 %vm335_vm1, %v3698_v22 }
  0x5e   : > { %3082 = vmatprep.mubr.msk.f32.mxu0 %vm335_vm1, %v3701_v19 }
  0x5f   : > { %3057 = vmatmul.mubr.msk.f32.gmra.mrb[36].mxu1 %vm335_vm1, %v3441_v24 }
  0x60   : > { %3059 = vmatprep.mubr.msk.f32.mxu1 %vm335_vm1, %v3528_v1 }
  0x61   : > { %3083 = vmatmul.mubr.msk.f32.gmra.mrb[36].mxu0 %vm335_vm1, %v3718_v31 }
  0x62   : > { %3085 = vmatprep.mubr.msk.f32.mxu0 %vm335_vm1, %v3801_v50 }
  0x63   : > { %3060 = vmatmul.mubr.msk.f32.gmra.mrb[38].mxu1 %vm335_vm1, %v3531_v2 }
  0x64   : > { %3090 = vmatprep.mubr.msk.f32.mxu1 %vm335_vm1, %v3488_v52 }
  0x65   : > { %3086 = vmatmul.mubr.msk.f32.gmra.mrb[38].mxu0 %vm335_vm1, %v3568_v32 }
  0x66   : > { %3116 = vmatprep.mubr.msk.f32.mxu0 %vm335_vm1, %v3411_v14 }
  0x67   : > { %3091 = vmatmul.mubr.msk.f32.vlgmr.msra.gmra.mrb[40].mxu1 %vm335_vm1, %v3516_v61  ;;  %v321_v61 = vld [vmem:[#allocation2 + $0x10] sm:$0xff] }
  0x68   : > { %3141 = vmatpush3.msk.msra.mxu1 %vm384_vm0, %v300_v16  ;;  %3093 = vmatprep.mubr.msk.f32.mxu1 %vm335_vm1, %v3519_v62 }
  0x69   : > { %3117 = vmatmul.mubr.msk.f32.vlgmr.msra.gmra.mrb[40].mxu0 %vm335_vm1, %v3430_v20  ;;  %v330_v20 = vld [vmem:[#allocation2 + $0x58] sm:$0xff] }
  0x6a   : > { %3167 = vmatpush3.msk.msra.mxu0 %vm384_vm0, %v301_v10  ;;  %3119 = vmatprep.mubr.msk.f32.mxu0 %vm335_vm1, %v3436_v23 }
  0x6b   : > { %3094 = vmatmul.mubr.msk.f32.gmra.mrb[42].mxu1 %vm335_vm1, %v3522_v63 }
  0x6c   : > { %3096 = vmatprep.mubr.msk.f32.mxu1 %vm335_vm1, %v3582_v39 }
  0x6d   : > { %3120 = vmatmul.mubr.msk.f32.gmra.mrb[42].mxu0 %vm335_vm1, %v3455_v33 }
  0x6e   : > { %3122 = vmatprep.mubr.msk.f32.mxu0 %vm335_vm1, %v3359_v3  ;;  %v328_v3 = vld [vmem:[#allocation2 + $0x48] sm:$0xff] }
  0x6f   : > { %3097 = vmatmul.mubr.msk.f32.gmra.mrb[44].mxu1 %vm335_vm1, %v3634_v58 }
  0x70   : > { %3099 = vmatprep.mubr.msk.f32.mxu1 %vm335_vm1, %v3639_v53 }
  0x71   : > { %3123 = vmatmul.mubr.msk.f32.gmra.mrb[44].mxu0 %vm335_vm1, %v3362_v4  ;;  %v327_v4 = vld [vmem:[#allocation2 + $0x40] sm:$0xff] }
  0x72   : > { %3125 = vmatprep.mubr.msk.f32.mxu0 %vm335_vm1, %v3365_v5 }
  0x73   : > { %3100 = vmatmul.mubr.msk.f32.gmra.mrb[46].mxu1 %vm335_vm1, %v3661_v29 }
  0x74   : > { %3102 = vmatprep.mubr.msk.f32.mxu1 %vm335_vm1, %v3666_v30 }
  0x75   : > { %3126 = vmatmul.mubr.msk.f32.gmra.mrb[46].mxu0 %vm335_vm1, %v3385_v9  ;;  %v320_v9 = vld [vmem:[#allocation2 + $0x8] sm:$0xff] }
  0x76   : > { %3128 = vmatprep.mubr.msk.f32.mxu0 %vm335_vm1, %v3398_v12 }
  0x77   : > { %3103 = vmatmul.mubr.msk.f32.gmra.mrb[48].mxu1 %vm335_vm1, %v3686_v43 }
  0x78   : > { %3105 = vmatprep.mubr.msk.f32.mxu1 %vm335_vm1, %v3691_v8 }
  0x79   : > { %3129 = vmatmul.mubr.msk.f32.gmra.mrb[48].mxu0 %vm335_vm1, %v3418_v15  ;;  %v319_v15 = vld [vmem:[#allocation2] sm:$0xff] }
  0x7a   : > { %3131 = vmatprep.mubr.msk.f32.mxu0 %vm335_vm1, %v3424_v18 }
  0x7b   : > { %3106 = vmatmul.mubr.msk.f32.gmra.mrb[50].mxu1 %vm335_vm1, %v3708_v27 }
  0x7c   : > { %3108 = vmatprep.mubr.msk.f32.mxu1 %vm335_vm1, %v3713_v25 }
  0x7d   : > { %3132 = vmatmul.mubr.msk.f32.gmra.mrb[50].mxu0 %vm335_vm1, %v3441_v24  ;;  %v329_v24 = vld [vmem:[#allocation2 + $0x50] sm:$0xff] }
  0x7e   : > { %3134 = vmatprep.mubr.msk.f32.mxu0 %vm335_vm1, %v3528_v1 }
  0x7f   : > { %3109 = vmatmul.mubr.msk.f32.gmra.mrb[52].mxu1 %vm335_vm1, %v3725_v35 }
  0x80   : > { %3111 = vmatprep.mubr.msk.f32.mxu1 %vm335_vm1, %v3558_v28 }
  0x81   : > { %3135 = vmatmul.mubr.msk.f32.gmra.mrb[52].mxu0 %vm335_vm1, %v3531_v2  ;;  %v331_v2 = vld [vmem:[#allocation2 + $0x60] sm:$0xff] }
  0x82   : > { %3137 = vmatprep.mubr.msk.f32.mxu0 %vm335_vm1, %v3534_v6 }
  0x83   : > { %3112 = vmatmul.mubr.msk.f32.gmra.mrb[54].mxu1 %vm335_vm1, %v3571_v34 }
  0x84   : > { %3142 = vmatprep.mubr.msk.f32.mxu1 %vm335_vm1, %v3485_v51 }
  0x85   : > { %3138 = vmatmul.mubr.msk.f32.gmra.mrb[54].mxu0 %vm335_vm1, %v3552_v26 }
  0x86   : > { %3168 = vmatprep.mubr.msk.f32.mxu0 %vm335_vm1, %v3519_v62 }
  0x87   : > { %3143 = vmatmul.mubr.msk.f32.vlgmr.msra.gmra.mrb[56].mxu1 %vm335_vm1, %v3500_v56  ;;  %v322_v56 = vld [vmem:[#allocation2 + $0x18] sm:$0xff] }
  0x88   : > { %3145 = vmatprep.mubr.msk.f32.mxu1 %vm335_vm1, %v3505_v57 }
  0x89   : > { %3169 = vmatmul.mubr.msk.f32.vlgmr.msra.gmra.mrb[56].mxu0 %vm335_vm1, %v3522_v63  ;;  %v332_v63 = vld [vmem:[#allocation2 + $0x68] sm:$0xff] }
  0x8a   : > { %3171 = vmatprep.mubr.msk.f32.mxu0 %vm335_vm1, %v3582_v39 }
  0x8b   : > { %3146 = vmatmul.mubr.msk.f32.gmra.mrb[58].mxu1 %vm335_vm1, %v3614_v47  ;;  %v334_v47 = vld [vmem:[#allocation2 + $0x78] sm:$0xff] }
  0x8c   : > { %3148 = vmatprep.mubr.msk.f32.mxu1 %vm335_vm1, %v3624_v60  ;;  %v333_v60 = vld [vmem:[#allocation2 + $0x70] sm:$0xff] }
  0x8d   : > { %3172 = vmatmul.mubr.msk.f32.gmra.mrb[58].mxu0 %vm335_vm1, %v3634_v58 }
  0x8e   : > { %3174 = vmatprep.mubr.msk.f32.mxu0 %vm335_vm1, %v3639_v53 }
  0x8f   : > { %3149 = vmatmul.mubr.msk.f32.gmra.mrb[60].mxu1 %vm335_vm1, %v3648_v11 }
  0x90   : > { %3151 = vmatprep.mubr.msk.f32.mxu1 %vm335_vm1, %v3651_v21 }
  0x91   : > { %3175 = vmatmul.mubr.msk.f32.gmra.mrb[60].mxu0 %vm335_vm1, %v3661_v29  ;;  %v326_v29 = vld [vmem:[#allocation2 + $0x38] sm:$0xff] }
  0x92   : > { %3177 = vmatprep.mubr.msk.f32.mxu0 %vm335_vm1, %v3666_v30 }
  0x93   : > { %3152 = vmatmul.mubr.msk.f32.gmra.mrb[62].mxu1 %vm335_vm1, %v3673_v36 }
  0x94   : > { %3154 = vmatprep.mubr.msk.f32.mxu1 %vm335_vm1, %v3676_v40 }
  0x95   : > { %3178 = vmatmul.mubr.msk.f32.gmra.mrb[62].mxu0 %vm335_vm1, %v3686_v43 }
  0x96   : > { %3180 = vmatprep.mubr.msk.f32.mxu0 %vm335_vm1, %v3691_v8 }
  0x97   : > { %3155 = vmatmul.mubr.msk.f32.gmra.mrb[64].mxu1 %vm335_vm1, %v3698_v22 }
  0x98   : > { %3157 = vmatprep.mubr.msk.f32.mxu1 %vm335_vm1, %v3701_v19 }
  0x99   : > { %3181 = vmatmul.mubr.msk.f32.gmra.mrb[64].mxu0 %vm335_vm1, %v3708_v27 }
  0x9a   : > { %3183 = vmatprep.mubr.msk.f32.mxu0 %vm335_vm1, %v3713_v25 }
  0x9b   : > { %3158 = vmatmul.mubr.msk.f32.gmra.mrb[66].mxu1 %vm335_vm1, %v3718_v31 }
  0x9c   : > { %3160 = vmatprep.mubr.msk.f32.mxu1 %vm335_vm1, %v3801_v50 }
  0x9d   : > { %3184 = vmatmul.mubr.msk.f32.gmra.mrb[66].mxu0 %vm335_vm1, %v3725_v35 }
  0x9e   : > { %3186 = vmatprep.mubr.msk.f32.mxu0 %vm335_vm1, %v3558_v28 }
  0x9f   : > { %3161 = vmatmul.mubr.msk.f32.gmra.mrb[68].mxu1 %vm335_vm1, %v3568_v32 }
  0xa0   : > { %3163 = vmatprep.mubr.msk.f32.mxu1 %vm335_vm1, %v3577_v37 }
  0xa1   : > { %3187 = vmatmul.mubr.msk.f32.gmra.mrb[68].mxu0 %vm335_vm1, %v3571_v34  ;;  %v324_v34 = vld [vmem:[#allocation2 + $0x28] sm:$0xff] }
  0xa2   : > { %3189 = vmatprep.mubr.msk.f32.mxu0 %vm335_vm1, %v3589_v42 }
  0xa3   : > { %3164 = vmatmul.mubr.msk.f32.gmra.mrb[70].mxu1 %vm335_vm1, %v3586_v41  ;;  %v323_v41 = vld [vmem:[#allocation2 + $0x20] sm:$0xff] }
  0xa5   : > { %3190 = vmatmul.mubr.msk.f32.gmra.mrb[70].mxu0 %vm335_vm1, %v3617_v49 }
  0xea   : > { %v2974_v5 = vpop.f32.mrb[0].mxu1 }
  0xeb   : > { %v542_v12 = vadd.f32 %v2974_v5, %v328_v3  ;;  %v494_v14 = vpop.f32.mrb[1].mxu1 }
  0xec   : > { %v541_v18 = vadd.f32 %v494_v14, %v327_v4  ;;  %v2962_v23 = vpop.f32.mrb[0].mxu0 }
  0xed   : > { %558 = vst.msk [vmem:[#allocation2 + $0x48] sm:$0xff] %vm302_vm4, %v542_v12  ;;  %v534_v33 = vadd.f32 %v2962_v23, %v320_v9  ;;  %v454_v51 = vpop.f32.mrb[1].mxu0 }
  0xee   : > { %557 = vst.msk [vmem:[#allocation2 + $0x40] sm:$0xff] %vm302_vm4, %v541_v18  ;;  %v2977_v52 = vpop.f32.mrb[2].mxu1  ;;  %v533_v55 = vadd.f32 %v454_v51, %v319_v15 }
  0xef   : > { %v544_v57 = vadd.f32 %v2977_v52, %v330_v20  ;;  %v504_v59 = vpop.f32.mrb[3].mxu1  ;;  %550 = vst.msk [vmem:[#allocation2 + $0x8] sm:$0xff] %vm302_vm4, %v534_v33 }
  0xf0   : > { %v543_v62 = vadd.f32 %v504_v59, %v329_v24  ;;  %549 = vst.msk [vmem:[#allocation2] sm:$0xff] %vm302_vm4, %v533_v55  ;;  %v2965_v1 = vpop.f32.mrb[2].mxu0 }
  0xf1   : > { %560 = vst.msk [vmem:[#allocation2 + $0x58] sm:$0xff] %vm302_vm4, %v544_v57  ;;  %v536_v6 = vadd.f32 %v2965_v1, %v322_v56  ;;  %v464_v26 = vpop.f32.mrb[3].mxu0 }
  0xf2   : > { %559 = vst.msk [vmem:[#allocation2 + $0x50] sm:$0xff] %vm302_vm4, %v543_v62  ;;  %v2980_v28 = vpop.f32.mrb[4].mxu1  ;;  %v535_v32 = vadd.f32 %v464_v26, %v321_v61 }
  0xf3   : > { %v546_v37 = vadd.f32 %v2980_v28, %v332_v63  ;;  %v514_v39 = vpop.f32.mrb[5].mxu1  ;;  %552 = vst.msk [vmem:[#allocation2 + $0x18] sm:$0xff] %vm302_vm4, %v536_v6 }
  0xf4   : > { %v545_v42 = vadd.f32 %v514_v39, %v331_v2  ;;  %551 = vst.msk [vmem:[#allocation2 + $0x10] sm:$0xff] %vm302_vm4, %v535_v32  ;;  %v2968_v49 = vpop.f32.mrb[4].mxu0  ;;  %v574_v26 = vld [vmem:[#allocation2 + $0x48] sm:$0xff] }
  0xf5   : > { %562 = vst.msk [vmem:[#allocation2 + $0x68] sm:$0xff] %vm302_vm4, %v546_v37  ;;  %v538_v58 = vadd.f32 %v2968_v49, %v324_v34  ;;  %v474_v53 = vpop.f32.mrb[5].mxu0  ;;  %v573_v34 = vld [vmem:[#allocation2 + $0x40] sm:$0xff] }
  0xf6   : > { %561 = vst.msk [vmem:[#allocation2 + $0x60] sm:$0xff] %vm302_vm4, %v545_v42  ;;  %v2983_v11 = vpop.f32.mrb[6].mxu1  ;;  %v537_v21 = vadd.f32 %v474_v53, %v323_v41  ;;  %v566_v46 = vld [vmem:[#allocation2 + $0x8] sm:$0xff] }
  0xf7   : > { %v548_v30 = vadd.f32 %v2983_v11, %v334_v47  ;;  %v524_v36 = vpop.f32.mrb[7].mxu1  ;;  %554 = vst.msk [vmem:[#allocation2 + $0x28] sm:$0xff] %vm302_vm4, %v538_v58  ;;  %v565_v45 = vld [vmem:[#allocation2] sm:$0xff] }
  0xf8   : > { %v547_v40 = vadd.f32 %v524_v36, %v333_v60  ;;  %553 = vst.msk [vmem:[#allocation2 + $0x20] sm:$0xff] %vm302_vm4, %v537_v21  ;;  %v2971_v48 = vpop.f32.mrb[6].mxu0  ;;  %v576_v53 = vld [vmem:[#allocation2 + $0x58] sm:$0xff] }
  0xf9   : > { %564 = vst.msk [vmem:[#allocation2 + $0x78] sm:$0xff] %vm302_vm4, %v548_v30  ;;  %v540_v43 = vadd.f32 %v2971_v48, %v326_v29  ;;  %v484_v0 = vpop.f32.mrb[7].mxu0  ;;  %v575_v29 = vld [vmem:[#allocation2 + $0x50] sm:$0xff] }
  0xfa   : > { %563 = vst.msk [vmem:[#allocation2 + $0x70] sm:$0xff] %vm302_vm4, %v547_v40  ;;  %v2988_v8 = vpop.f32.mrb[8].mxu1  ;;  %v539_v17 = vadd.f32 %v484_v0, %v325_v38  ;;  %v568_v27 = vld [vmem:[#allocation2 + $0x18] sm:$0xff] }
  0xfb   : > { %v811_v7 = vadd.f32 %v2988_v8, %v566_v46  ;;  %v731_v22 = vpop.f32.mrb[9].mxu1  ;;  %556 = vst.msk [vmem:[#allocation2 + $0x38] sm:$0xff] %vm302_vm4, %v540_v43  ;;  %v567_v25 = vld [vmem:[#allocation2 + $0x10] sm:$0xff] }
  0xfc   : > { %v810_v19 = vadd.f32 %v731_v22, %v565_v45  ;;  %555 = vst.msk [vmem:[#allocation2 + $0x30] sm:$0xff] %vm302_vm4, %v539_v17  ;;  %v3014_v54 = vpop.f32.mrb[8].mxu0  ;;  %v578_v0 = vld [vmem:[#allocation2 + $0x68] sm:$0xff] }
  0xfd   : > { %827 = vst.msk [vmem:[#allocation2 + $0x8] sm:$0xff] %vm302_vm4, %v811_v7  ;;  %v1000_v31 = vpop.f32.mrb[9].mxu0  ;;  %v577_v7 = vld [vmem:[#allocation2 + $0x60] sm:$0xff] }
  0xfe   : > { %826 = vst.msk [vmem:[#allocation2] sm:$0xff] %vm302_vm4, %v810_v19  ;;  %v2991_v35 = vpop.f32.mrb[10].mxu1  ;;  %v570_v44 = vld [vmem:[#allocation2 + $0x28] sm:$0xff] }
  0xff   : > { %v813_v16 = vadd.f32 %v2991_v35, %v568_v27  ;;  %v741_v10 = vpop.f32.mrb[11].mxu1  ;;  %v569_v3 = vld [vmem:[#allocation2 + $0x20] sm:$0xff] }
 0x100   : > { %v812_v13 = vadd.f32 %v741_v10, %v567_v25  ;;  %v3017_v50 = vpop.f32.mrb[10].mxu0  ;;  %v580_v10 = vld [vmem:[#allocation2 + $0x78] sm:$0xff] }
 0x101   : > { %829 = vst.msk [vmem:[#allocation2 + $0x18] sm:$0xff] %vm302_vm4, %v813_v16  ;;  %v1010_v4 = vpop.f32.mrb[11].mxu0 }
 0x102   : > { %828 = vst.msk [vmem:[#allocation2 + $0x10] sm:$0xff] %vm302_vm4, %v812_v13  ;;  %v2994_v5 = vpop.f32.mrb[12].mxu1  ;;  %v572_v18 = vld [vmem:[#allocation2 + $0x38] sm:$0xff] }
 0x103   : > { %v815_v9 = vadd.f32 %v2994_v5, %v570_v44  ;;  %v751_v12 = vpop.f32.mrb[13].mxu1  ;;  %v571_v33 = vld [vmem:[#allocation2 + $0x30] sm:$0xff] }
 0x104   : > { %v814_v14 = vadd.f32 %v751_v12, %v569_v3  ;;  %v843_v15 = vld [vmem:[#allocation2 + $0x8] sm:$0xff]  ;;  %v3020_v20 = vpop.f32.mrb[12].mxu0 }
 0x105   : > { %831 = vst.msk [vmem:[#allocation2 + $0x28] sm:$0xff] %vm302_vm4, %v815_v9  ;;  %v1080_v23 = vadd.f32 %v3014_v54, %v843_v15  ;;  %v842_v24 = vld [vmem:[#allocation2] sm:$0xff]  ;;  %v1020_v51 = vpop.f32.mrb[13].mxu0 }
 0x106   : > { %830 = vst.msk [vmem:[#allocation2 + $0x20] sm:$0xff] %vm302_vm4, %v814_v14  ;;  %v1079_v52 = vadd.f32 %v1000_v31, %v842_v24  ;;  %v2997_v55 = vpop.f32.mrb[14].mxu1 }
 0x107   : > { %1096 = vst.msk [vmem:[#allocation2 + $0x8] sm:$0xff] %vm302_vm4, %v1080_v23  ;;  %v817_v56 = vadd.f32 %v2997_v55, %v572_v18  ;;  %v761_v57 = vpop.f32.mrb[15].mxu1 }
 0x108   : > { %1095 = vst.msk [vmem:[#allocation2] sm:$0xff] %vm302_vm4, %v1079_v52  ;;  %v816_v59 = vadd.f32 %v761_v57, %v571_v33  ;;  %v845_v61 = vld [vmem:[#allocation2 + $0x18] sm:$0xff]  ;;  %v3023_v62 = vpop.f32.mrb[14].mxu0 }
 0x109   : > { %833 = vst.msk [vmem:[#allocation2 + $0x38] sm:$0xff] %vm302_vm4, %v817_v56  ;;  %v1082_v63 = vadd.f32 %v3017_v50, %v845_v61  ;;  %v844_v1 = vld [vmem:[#allocation2 + $0x10] sm:$0xff]  ;;  %v1030_v2 = vpop.f32.mrb[15].mxu0 }
 0x10a   : > { %832 = vst.msk [vmem:[#allocation2 + $0x30] sm:$0xff] %vm302_vm4, %v816_v59  ;;  %v1081_v6 = vadd.f32 %v1010_v4, %v844_v1  ;;  %v3000_v28 = vpop.f32.mrb[16].mxu1  ;;  %v579_v50 = vld [vmem:[#allocation2 + $0x70] sm:$0xff] }
 0x10b   : > { %1098 = vst.msk [vmem:[#allocation2 + $0x18] sm:$0xff] %vm302_vm4, %v1082_v63  ;;  %v819_v32 = vadd.f32 %v3000_v28, %v574_v26  ;;  %v771_v37 = vpop.f32.mrb[17].mxu1 }
 0x10c   : > { %1097 = vst.msk [vmem:[#allocation2 + $0x10] sm:$0xff] %vm302_vm4, %v1081_v6  ;;  %v818_v39 = vadd.f32 %v771_v37, %v573_v34  ;;  %v847_v41 = vld [vmem:[#allocation2 + $0x28] sm:$0xff]  ;;  %v3026_v42 = vpop.f32.mrb[16].mxu0 }
 0x10d   : > { %835 = vst.msk [vmem:[#allocation2 + $0x48] sm:$0xff] %vm302_vm4, %v819_v32  ;;  %v1084_v47 = vadd.f32 %v3020_v20, %v847_v41  ;;  %v846_v49 = vld [vmem:[#allocation2 + $0x20] sm:$0xff]  ;;  %v1040_v60 = vpop.f32.mrb[17].mxu0 }
 0x10e   : > { %834 = vst.msk [vmem:[#allocation2 + $0x40] sm:$0xff] %vm302_vm4, %v818_v39  ;;  %v1083_v58 = vadd.f32 %v1020_v51, %v846_v49  ;;  %v3003_v11 = vpop.f32.mrb[18].mxu1  ;;  %v1112_v20 = vld [vmem:[#allocation2 + $0x8] sm:$0xff] }
 0x10f   : > { %1100 = vst.msk [vmem:[#allocation2 + $0x28] sm:$0xff] %vm302_vm4, %v1084_v47  ;;  %v821_v21 = vadd.f32 %v3003_v11, %v576_v53  ;;  %v781_v30 = vpop.f32.mrb[19].mxu1  ;;  %v1111_v33 = vld [vmem:[#allocation2] sm:$0xff] }
 0x110   : > { %1099 = vst.msk [vmem:[#allocation2 + $0x20] sm:$0xff] %vm302_vm4, %v1083_v58  ;;  %v820_v36 = vadd.f32 %v781_v30, %v575_v29  ;;  %v849_v38 = vld [vmem:[#allocation2 + $0x38] sm:$0xff]  ;;  %v3029_v40 = vpop.f32.mrb[18].mxu0 }
 0x111   : > { %837 = vst.msk [vmem:[#allocation2 + $0x58] sm:$0xff] %vm302_vm4, %v821_v21  ;;  %v1086_v46 = vadd.f32 %v3023_v62, %v849_v38  ;;  %v848_v48 = vld [vmem:[#allocation2 + $0x30] sm:$0xff]  ;;  %v1050_v45 = vpop.f32.mrb[19].mxu0 }
 0x112   : > { %836 = vst.msk [vmem:[#allocation2 + $0x50] sm:$0xff] %vm302_vm4, %v820_v36  ;;  %v1085_v43 = vadd.f32 %v1030_v2, %v848_v48  ;;  %v3006_v8 = vpop.f32.mrb[20].mxu1  ;;  %v1114_v63 = vld [vmem:[#allocation2 + $0x18] sm:$0xff] }
 0x113   : > { %1102 = vst.msk [vmem:[#allocation2 + $0x38] sm:$0xff] %vm302_vm4, %v1086_v46  ;;  %v823_v17 = vadd.f32 %v3006_v8, %v578_v0  ;;  %v791_v22 = vpop.f32.mrb[21].mxu1  ;;  %v1113_v6 = vld [vmem:[#allocation2 + $0x10] sm:$0xff] }
 0x114   : > { %1101 = vst.msk [vmem:[#allocation2 + $0x30] sm:$0xff] %vm302_vm4, %v1085_v43  ;;  %v822_v19 = vadd.f32 %v791_v22, %v577_v7  ;;  %v851_v27 = vld [vmem:[#allocation2 + $0x48] sm:$0xff]  ;;  %v3032_v54 = vpop.f32.mrb[20].mxu0 }
 0x115   : > { %839 = vst.msk [vmem:[#allocation2 + $0x68] sm:$0xff] %vm302_vm4, %v823_v17  ;;  %v1088_v25 = vadd.f32 %v3026_v42, %v851_v27  ;;  %v850_v31 = vld [vmem:[#allocation2 + $0x40] sm:$0xff]  ;;  %v1060_v35 = vpop.f32.mrb[21].mxu0 }
 0x116   : > { %838 = vst.msk [vmem:[#allocation2 + $0x60] sm:$0xff] %vm302_vm4, %v822_v19  ;;  %v1087_v16 = vadd.f32 %v1040_v60, %v850_v31  ;;  %v3009_v13 = vpop.f32.mrb[22].mxu1  ;;  %v1116_v47 = vld [vmem:[#allocation2 + $0x28] sm:$0xff] }
 0x117   : > { %1104 = vst.msk [vmem:[#allocation2 + $0x48] sm:$0xff] %vm302_vm4, %v1088_v25  ;;  %v825_v44 = vadd.f32 %v3009_v13, %v580_v10  ;;  %v801_v3 = vpop.f32.mrb[23].mxu1  ;;  %v1115_v58 = vld [vmem:[#allocation2 + $0x20] sm:$0xff] }
 0x118   : > { %1103 = vst.msk [vmem:[#allocation2 + $0x40] sm:$0xff] %vm302_vm4, %v1087_v16  ;;  %v824_v4 = vadd.f32 %v801_v3, %v579_v50  ;;  %v853_v5 = vld [vmem:[#allocation2 + $0x58] sm:$0xff]  ;;  %v3035_v9 = vpop.f32.mrb[22].mxu0 }
 0x119   : > { %841 = vst.msk [vmem:[#allocation2 + $0x78] sm:$0xff] %vm302_vm4, %v825_v44  ;;  %v1090_v12 = vadd.f32 %v3029_v40, %v853_v5  ;;  %v852_v14 = vld [vmem:[#allocation2 + $0x50] sm:$0xff]  ;;  %v1070_v15 = vpop.f32.mrb[23].mxu0 }
 0x11a   : > { %840 = vst.msk [vmem:[#allocation2 + $0x70] sm:$0xff] %vm302_vm4, %v824_v4  ;;  %v1089_v18 = vadd.f32 %v1050_v45, %v852_v14  ;;  %v3040_v23 = vpop.f32.mrb[24].mxu1  ;;  %v1118_v46 = vld [vmem:[#allocation2 + $0x38] sm:$0xff] }
 0x11b   : > { %1106 = vst.msk [vmem:[#allocation2 + $0x58] sm:$0xff] %vm302_vm4, %v1090_v12  ;;  %v1282_v24 = vadd.f32 %v3040_v23, %v1112_v20  ;;  %v1202_v51 = vpop.f32.mrb[25].mxu1  ;;  %v1117_v43 = vld [vmem:[#allocation2 + $0x30] sm:$0xff] }
 0x11c   : > { %1105 = vst.msk [vmem:[#allocation2 + $0x50] sm:$0xff] %vm302_vm4, %v1089_v18  ;;  %v855_v52 = vld [vmem:[#allocation2 + $0x68] sm:$0xff]  ;;  %v1281_v55 = vadd.f32 %v1202_v51, %v1111_v33  ;;  %v3066_v56 = vpop.f32.mrb[24].mxu0 }
 0x11d   : > { %1298 = vst.msk [vmem:[#allocation2 + $0x8] sm:$0xff] %vm302_vm4, %v1282_v24  ;;  %v1092_v57 = vadd.f32 %v3032_v54, %v855_v52  ;;  %v854_v59 = vld [vmem:[#allocation2 + $0x60] sm:$0xff]  ;;  %v1408_v61 = vpop.f32.mrb[25].mxu0 }
 0x11e   : > { %1297 = vst.msk [vmem:[#allocation2] sm:$0xff] %vm302_vm4, %v1281_v55  ;;  %v1091_v62 = vadd.f32 %v1060_v35, %v854_v59  ;;  %v3043_v1 = vpop.f32.mrb[26].mxu1  ;;  %v1120_v25 = vld [vmem:[#allocation2 + $0x48] sm:$0xff] }
 0x11f   : > { %1108 = vst.msk [vmem:[#allocation2 + $0x68] sm:$0xff] %vm302_vm4, %v1092_v57  ;;  %v1284_v2 = vadd.f32 %v3043_v1, %v1114_v63  ;;  %v1212_v26 = vpop.f32.mrb[27].mxu1  ;;  %v1119_v16 = vld [vmem:[#allocation2 + $0x40] sm:$0xff] }
 0x120   : > { %1107 = vst.msk [vmem:[#allocation2 + $0x60] sm:$0xff] %vm302_vm4, %v1091_v62  ;;  %v857_v28 = vld [vmem:[#allocation2 + $0x78] sm:$0xff]  ;;  %v1283_v32 = vadd.f32 %v1212_v26, %v1113_v6  ;;  %v3069_v34 = vpop.f32.mrb[26].mxu0 }
 0x121   : > { %1300 = vst.msk [vmem:[#allocation2 + $0x18] sm:$0xff] %vm302_vm4, %v1284_v2  ;;  %v1094_v37 = vadd.f32 %v3035_v9, %v857_v28  ;;  %v856_v39 = vld [vmem:[#allocation2 + $0x70] sm:$0xff]  ;;  %v1418_v41 = vpop.f32.mrb[27].mxu0 }
 0x122   : > { %1299 = vst.msk [vmem:[#allocation2 + $0x10] sm:$0xff] %vm302_vm4, %v1283_v32  ;;  %v1093_v42 = vadd.f32 %v1070_v15, %v856_v39  ;;  %v3046_v49 = vpop.f32.mrb[28].mxu1  ;;  %v1122_v12 = vld [vmem:[#allocation2 + $0x58] sm:$0xff] }
 0x123   : > { %1110 = vst.msk [vmem:[#allocation2 + $0x78] sm:$0xff] %vm302_vm4, %v1094_v37  ;;  %v1286_v60 = vadd.f32 %v3046_v49, %v1116_v47  ;;  %v1222_v53 = vpop.f32.mrb[29].mxu1  ;;  %v1121_v18 = vld [vmem:[#allocation2 + $0x50] sm:$0xff] }
 0x124   : > { %1109 = vst.msk [vmem:[#allocation2 + $0x70] sm:$0xff] %vm302_vm4, %v1093_v42  ;;  %v1285_v11 = vadd.f32 %v1222_v53, %v1115_v58  ;;  %v1314_v21 = vld [vmem:[#allocation2 + $0x8] sm:$0xff]  ;;  %v3072_v29 = vpop.f32.mrb[28].mxu0 }
 0x125   : > { %1302 = vst.msk [vmem:[#allocation2 + $0x28] sm:$0xff] %vm302_vm4, %v1286_v60  ;;  %v1488_v30 = vadd.f32 %v3066_v56, %v1314_v21  ;;  %v1313_v36 = vld [vmem:[#allocation2] sm:$0xff]  ;;  %v1428_v38 = vpop.f32.mrb[29].mxu0 }
 0x126   : > { %1301 = vst.msk [vmem:[#allocation2 + $0x20] sm:$0xff] %vm302_vm4, %v1285_v11  ;;  %v1487_v40 = vadd.f32 %v1408_v61, %v1313_v36  ;;  %v3049_v48 = vpop.f32.mrb[30].mxu1  ;;  %v1124_v57 = vld [vmem:[#allocation2 + $0x68] sm:$0xff] }
 0x127   : > { %1504 = vst.msk [vmem:[#allocation2 + $0x8] sm:$0xff] %vm302_vm4, %v1488_v30  ;;  %v1288_v45 = vadd.f32 %v3049_v48, %v1118_v46  ;;  %v1232_v0 = vpop.f32.mrb[31].mxu1  ;;  %v1123_v62 = vld [vmem:[#allocation2 + $0x60] sm:$0xff] }
 0x128   : > { %1503 = vst.msk [vmem:[#allocation2] sm:$0xff] %vm302_vm4, %v1487_v40  ;;  %v1287_v8 = vadd.f32 %v1232_v0, %v1117_v43  ;;  %v1316_v17 = vld [vmem:[#allocation2 + $0x18] sm:$0xff]  ;;  %v3075_v7 = vpop.f32.mrb[30].mxu0 }
 0x129   : > { %1304 = vst.msk [vmem:[#allocation2 + $0x38] sm:$0xff] %vm302_vm4, %v1288_v45  ;;  %v1490_v22 = vadd.f32 %v3069_v34, %v1316_v17  ;;  %v1315_v19 = vld [vmem:[#allocation2 + $0x10] sm:$0xff]  ;;  %v1438_v27 = vpop.f32.mrb[31].mxu0 }
 0x12a   : > { %1303 = vst.msk [vmem:[#allocation2 + $0x30] sm:$0xff] %vm302_vm4, %v1287_v8  ;;  %v1489_v54 = vadd.f32 %v1418_v41, %v1315_v19  ;;  %v3052_v31 = vpop.f32.mrb[32].mxu1  ;;  %v1126_v37 = vld [vmem:[#allocation2 + $0x78] sm:$0xff] }
 0x12b   : > { %1506 = vst.msk [vmem:[#allocation2 + $0x18] sm:$0xff] %vm302_vm4, %v1490_v22  ;;  %v1290_v35 = vadd.f32 %v3052_v31, %v1120_v25  ;;  %v1242_v10 = vpop.f32.mrb[33].mxu1  ;;  %v1125_v42 = vld [vmem:[#allocation2 + $0x70] sm:$0xff] }
 0x12c   : > { %1505 = vst.msk [vmem:[#allocation2 + $0x10] sm:$0xff] %vm302_vm4, %v1489_v54  ;;  %v1289_v13 = vadd.f32 %v1242_v10, %v1119_v16  ;;  %v1318_v44 = vld [vmem:[#allocation2 + $0x28] sm:$0xff]  ;;  %v3078_v50 = vpop.f32.mrb[32].mxu0 }
 0x12d   : > { %1306 = vst.msk [vmem:[#allocation2 + $0x48] sm:$0xff] %vm302_vm4, %v1290_v35  ;;  %v1492_v3 = vadd.f32 %v3072_v29, %v1318_v44  ;;  %v1317_v4 = vld [vmem:[#allocation2 + $0x20] sm:$0xff]  ;;  %v1448_v5 = vpop.f32.mrb[33].mxu0 }
 0x12e   : > { %1305 = vst.msk [vmem:[#allocation2 + $0x40] sm:$0xff] %vm302_vm4, %v1289_v13  ;;  %v1491_v9 = vadd.f32 %v1428_v38, %v1317_v4  ;;  %v3055_v14 = vpop.f32.mrb[34].mxu1  ;;  %v1520_v30 = vld [vmem:[#allocation2 + $0x8] sm:$0xff] }
 0x12f   : > { %1508 = vst.msk [vmem:[#allocation2 + $0x28] sm:$0xff] %vm302_vm4, %v1492_v3  ;;  %v1292_v15 = vadd.f32 %v3055_v14, %v1122_v12  ;;  %v1252_v20 = vpop.f32.mrb[35].mxu1  ;;  %v1519_v40 = vld [vmem:[#allocation2] sm:$0xff] }
 0x130   : > { %1507 = vst.msk [vmem:[#allocation2 + $0x20] sm:$0xff] %vm302_vm4, %v1491_v9  ;;  %v1291_v23 = vadd.f32 %v1252_v20, %v1121_v18  ;;  %v1320_v24 = vld [vmem:[#allocation2 + $0x38] sm:$0xff]  ;;  %v3081_v33 = vpop.f32.mrb[34].mxu0 }
 0x131   : > { %1308 = vst.msk [vmem:[#allocation2 + $0x58] sm:$0xff] %vm302_vm4, %v1292_v15  ;;  %v1494_v51 = vadd.f32 %v3075_v7, %v1320_v24  ;;  %v1319_v52 = vld [vmem:[#allocation2 + $0x30] sm:$0xff]  ;;  %v1458_v55 = vpop.f32.mrb[35].mxu0 }
 0x132   : > { %1307 = vst.msk [vmem:[#allocation2 + $0x50] sm:$0xff] %vm302_vm4, %v1291_v23  ;;  %v1493_v56 = vadd.f32 %v1438_v27, %v1319_v52  ;;  %v3058_v59 = vpop.f32.mrb[36].mxu1  ;;  %v1522_v22 = vld [vmem:[#allocation2 + $0x18] sm:$0xff] }
 0x133   : > { %1510 = vst.msk [vmem:[#allocation2 + $0x38] sm:$0xff] %vm302_vm4, %v1494_v51  ;;  %v1294_v61 = vadd.f32 %v3058_v59, %v1124_v57  ;;  %v1262_v63 = vpop.f32.mrb[37].mxu1  ;;  %v1521_v54 = vld [vmem:[#allocation2 + $0x10] sm:$0xff] }
 0x134   : > { %1509 = vst.msk [vmem:[#allocation2 + $0x30] sm:$0xff] %vm302_vm4, %v1493_v56  ;;  %v1293_v1 = vadd.f32 %v1262_v63, %v1123_v62  ;;  %v1322_v2 = vld [vmem:[#allocation2 + $0x48] sm:$0xff]  ;;  %v3084_v6 = vpop.f32.mrb[36].mxu0 }
 0x135   : > { %1310 = vst.msk [vmem:[#allocation2 + $0x68] sm:$0xff] %vm302_vm4, %v1294_v61  ;;  %v1496_v26 = vadd.f32 %v3078_v50, %v1322_v2  ;;  %v1321_v28 = vld [vmem:[#allocation2 + $0x40] sm:$0xff]  ;;  %v1468_v32 = vpop.f32.mrb[37].mxu0 }
 0x136   : > { %1309 = vst.msk [vmem:[#allocation2 + $0x60] sm:$0xff] %vm302_vm4, %v1293_v1  ;;  %v1495_v34 = vadd.f32 %v1448_v5, %v1321_v28  ;;  %v3061_v39 = vpop.f32.mrb[38].mxu1  ;;  %v1524_v3 = vld [vmem:[#allocation2 + $0x28] sm:$0xff] }
 0x137   : > { %1512 = vst.msk [vmem:[#allocation2 + $0x48] sm:$0xff] %vm302_vm4, %v1496_v26  ;;  %v1296_v41 = vadd.f32 %v3061_v39, %v1126_v37  ;;  %v1272_v47 = vpop.f32.mrb[39].mxu1  ;;  %v1523_v9 = vld [vmem:[#allocation2 + $0x20] sm:$0xff] }
 0x138   : > { %1511 = vst.msk [vmem:[#allocation2 + $0x40] sm:$0xff] %vm302_vm4, %v1495_v34  ;;  %v1295_v49 = vadd.f32 %v1272_v47, %v1125_v42  ;;  %v1324_v60 = vld [vmem:[#allocation2 + $0x58] sm:$0xff]  ;;  %v3087_v58 = vpop.f32.mrb[38].mxu0 }
 0x139   : > { %1312 = vst.msk [vmem:[#allocation2 + $0x78] sm:$0xff] %vm302_vm4, %v1296_v41  ;;  %v1498_v53 = vadd.f32 %v3081_v33, %v1324_v60  ;;  %v1323_v11 = vld [vmem:[#allocation2 + $0x50] sm:$0xff]  ;;  %v1478_v21 = vpop.f32.mrb[39].mxu0 }
 0x13a   : > { %1311 = vst.msk [vmem:[#allocation2 + $0x70] sm:$0xff] %vm302_vm4, %v1295_v49  ;;  %v1497_v29 = vadd.f32 %v1458_v55, %v1323_v11  ;;  %v3092_v36 = vpop.f32.mrb[40].mxu1  ;;  %v1526_v51 = vld [vmem:[#allocation2 + $0x38] sm:$0xff] }
 0x13b   : > { %1514 = vst.msk [vmem:[#allocation2 + $0x58] sm:$0xff] %vm302_vm4, %v1498_v53  ;;  %v1693_v38 = vadd.f32 %v3092_v36, %v1520_v30  ;;  %v1613_v46 = vpop.f32.mrb[41].mxu1  ;;  %v1525_v56 = vld [vmem:[#allocation2 + $0x30] sm:$0xff] }
 0x13c   : > { %1513 = vst.msk [vmem:[#allocation2 + $0x50] sm:$0xff] %vm302_vm4, %v1497_v29  ;;  %v1326_v48 = vld [vmem:[#allocation2 + $0x68] sm:$0xff]  ;;  %v1692_v45 = vadd.f32 %v1613_v46, %v1519_v40  ;;  %v3118_v43 = vpop.f32.mrb[40].mxu0 }
 0x13d   : > { %1709 = vst.msk [vmem:[#allocation2 + $0x8] sm:$0xff] %vm302_vm4, %v1693_v38  ;;  %v1500_v0 = vadd.f32 %v3084_v6, %v1326_v48  ;;  %v1325_v8 = vld [vmem:[#allocation2 + $0x60] sm:$0xff]  ;;  %v1815_v17 = vpop.f32.mrb[41].mxu0 }
 0x13e   : > { %1708 = vst.msk [vmem:[#allocation2] sm:$0xff] %vm302_vm4, %v1692_v45  ;;  %v1499_v7 = vadd.f32 %v1468_v32, %v1325_v8  ;;  %v3095_v19 = vpop.f32.mrb[42].mxu1  ;;  %v1528_v26 = vld [vmem:[#allocation2 + $0x48] sm:$0xff] }
 0x13f   : > { %1516 = vst.msk [vmem:[#allocation2 + $0x68] sm:$0xff] %vm302_vm4, %v1500_v0  ;;  %v1695_v27 = vadd.f32 %v3095_v19, %v1522_v22  ;;  %v1623_v25 = vpop.f32.mrb[43].mxu1  ;;  %v1527_v34 = vld [vmem:[#allocation2 + $0x40] sm:$0xff] }
 0x140   : > { %1515 = vst.msk [vmem:[#allocation2 + $0x60] sm:$0xff] %vm302_vm4, %v1499_v7  ;;  %v1328_v31 = vld [vmem:[#allocation2 + $0x78] sm:$0xff]  ;;  %v1694_v35 = vadd.f32 %v1623_v25, %v1521_v54  ;;  %v3121_v16 = vpop.f32.mrb[42].mxu0 }
 0x141   : > { %1711 = vst.msk [vmem:[#allocation2 + $0x18] sm:$0xff] %vm302_vm4, %v1695_v27  ;;  %v1502_v10 = vadd.f32 %v3087_v58, %v1328_v31  ;;  %v1327_v13 = vld [vmem:[#allocation2 + $0x70] sm:$0xff]  ;;  %v1825_v44 = vpop.f32.mrb[43].mxu0 }
 0x142   : > { %1710 = vst.msk [vmem:[#allocation2 + $0x10] sm:$0xff] %vm302_vm4, %v1694_v35  ;;  %v1501_v50 = vadd.f32 %v1478_v21, %v1327_v13  ;;  %v3098_v4 = vpop.f32.mrb[44].mxu1  ;;  %v1530_v53 = vld [vmem:[#allocation2 + $0x58] sm:$0xff] }
 0x143   : > { %1518 = vst.msk [vmem:[#allocation2 + $0x78] sm:$0xff] %vm302_vm4, %v1502_v10  ;;  %v1697_v5 = vadd.f32 %v3098_v4, %v1524_v3  ;;  %v1633_v12 = vpop.f32.mrb[45].mxu1  ;;  %v1529_v29 = vld [vmem:[#allocation2 + $0x50] sm:$0xff] }
 0x144   : > { %1517 = vst.msk [vmem:[#allocation2 + $0x70] sm:$0xff] %vm302_vm4, %v1501_v50  ;;  %v1696_v14 = vadd.f32 %v1633_v12, %v1523_v9  ;;  %v1725_v15 = vld [vmem:[#allocation2 + $0x8] sm:$0xff]  ;;  %v3124_v18 = vpop.f32.mrb[44].mxu0 }
 0x145   : > { %1713 = vst.msk [vmem:[#allocation2 + $0x28] sm:$0xff] %vm302_vm4, %v1697_v5  ;;  %v1895_v20 = vadd.f32 %v3118_v43, %v1725_v15  ;;  %v1724_v23 = vld [vmem:[#allocation2] sm:$0xff]  ;;  %v1835_v24 = vpop.f32.mrb[45].mxu0 }
 0x146   : > { %1712 = vst.msk [vmem:[#allocation2 + $0x20] sm:$0xff] %vm302_vm4, %v1696_v14  ;;  %v1894_v33 = vadd.f32 %v1815_v17, %v1724_v23  ;;  %v3101_v52 = vpop.f32.mrb[46].mxu1  ;;  %v1532_v0 = vld [vmem:[#allocation2 + $0x68] sm:$0xff] }
 0x147   : > { %1911 = vst.msk [vmem:[#allocation2 + $0x8] sm:$0xff] %vm302_vm4, %v1895_v20  ;;  %v1699_v55 = vadd.f32 %v3101_v52, %v1526_v51  ;;  %v1643_v57 = vpop.f32.mrb[47].mxu1  ;;  %v1531_v7 = vld [vmem:[#allocation2 + $0x60] sm:$0xff] }
 0x148   : > { %1910 = vst.msk [vmem:[#allocation2] sm:$0xff] %vm302_vm4, %v1894_v33  ;;  %v1698_v59 = vadd.f32 %v1643_v57, %v1525_v56  ;;  %v1727_v61 = vld [vmem:[#allocation2 + $0x18] sm:$0xff]  ;;  %v3127_v62 = vpop.f32.mrb[46].mxu0 }
 0x149   : > { %1715 = vst.msk [vmem:[#allocation2 + $0x38] sm:$0xff] %vm302_vm4, %v1699_v55  ;;  %v1897_v63 = vadd.f32 %v3121_v16, %v1727_v61  ;;  %v1726_v1 = vld [vmem:[#allocation2 + $0x10] sm:$0xff]  ;;  %v1845_v2 = vpop.f32.mrb[47].mxu0 }
 0x14a   : > { %1714 = vst.msk [vmem:[#allocation2 + $0x30] sm:$0xff] %vm302_vm4, %v1698_v59  ;;  %v1896_v6 = vadd.f32 %v1825_v44, %v1726_v1  ;;  %v3104_v28 = vpop.f32.mrb[48].mxu1  ;;  %v1534_v10 = vld [vmem:[#allocation2 + $0x78] sm:$0xff] }
 0x14b   : > { %1913 = vst.msk [vmem:[#allocation2 + $0x18] sm:$0xff] %vm302_vm4, %v1897_v63  ;;  %v1701_v32 = vadd.f32 %v3104_v28, %v1528_v26  ;;  %v1653_v37 = vpop.f32.mrb[49].mxu1  ;;  %v1533_v50 = vld [vmem:[#allocation2 + $0x70] sm:$0xff] }
 0x14c   : > { %1912 = vst.msk [vmem:[#allocation2 + $0x10] sm:$0xff] %vm302_vm4, %v1896_v6  ;;  %v1700_v39 = vadd.f32 %v1653_v37, %v1527_v34  ;;  %v1729_v41 = vld [vmem:[#allocation2 + $0x28] sm:$0xff]  ;;  %v3130_v42 = vpop.f32.mrb[48].mxu0 }
 0x14d   : > { %1717 = vst.msk [vmem:[#allocation2 + $0x48] sm:$0xff] %vm302_vm4, %v1701_v32  ;;  %v1899_v47 = vadd.f32 %v3124_v18, %v1729_v41  ;;  %v1728_v49 = vld [vmem:[#allocation2 + $0x20] sm:$0xff]  ;;  %v1855_v60 = vpop.f32.mrb[49].mxu0 }
 0x14e   : > { %1716 = vst.msk [vmem:[#allocation2 + $0x40] sm:$0xff] %vm302_vm4, %v1700_v39  ;;  %v1898_v58 = vadd.f32 %v1835_v24, %v1728_v49  ;;  %v3107_v11 = vpop.f32.mrb[50].mxu1  ;;  %v1927_v20 = vld [vmem:[#allocation2 + $0x8] sm:$0xff] }
 0x14f   : > { %1915 = vst.msk [vmem:[#allocation2 + $0x28] sm:$0xff] %vm302_vm4, %v1899_v47  ;;  %v1703_v21 = vadd.f32 %v3107_v11, %v1530_v53  ;;  %v1663_v30 = vpop.f32.mrb[51].mxu1  ;;  %v1926_v33 = vld [vmem:[#allocation2] sm:$0xff] }
 0x150   : > { %1914 = vst.msk [vmem:[#allocation2 + $0x20] sm:$0xff] %vm302_vm4, %v1898_v58  ;;  %v1702_v36 = vadd.f32 %v1663_v30, %v1529_v29  ;;  %v1731_v38 = vld [vmem:[#allocation2 + $0x38] sm:$0xff]  ;;  %v3133_v40 = vpop.f32.mrb[50].mxu0 }
 0x151   : > { %1719 = vst.msk [vmem:[#allocation2 + $0x58] sm:$0xff] %vm302_vm4, %v1703_v21  ;;  %v1901_v46 = vadd.f32 %v3127_v62, %v1731_v38  ;;  %v1730_v48 = vld [vmem:[#allocation2 + $0x30] sm:$0xff]  ;;  %v1865_v45 = vpop.f32.mrb[51].mxu0 }
 0x152   : > { %1718 = vst.msk [vmem:[#allocation2 + $0x50] sm:$0xff] %vm302_vm4, %v1702_v36  ;;  %v1900_v43 = vadd.f32 %v1845_v2, %v1730_v48  ;;  %v3110_v8 = vpop.f32.mrb[52].mxu1  ;;  %v1929_v63 = vld [vmem:[#allocation2 + $0x18] sm:$0xff] }
 0x153   : > { %1917 = vst.msk [vmem:[#allocation2 + $0x38] sm:$0xff] %vm302_vm4, %v1901_v46  ;;  %v1705_v17 = vadd.f32 %v3110_v8, %v1532_v0  ;;  %v1673_v22 = vpop.f32.mrb[53].mxu1  ;;  %v1928_v6 = vld [vmem:[#allocation2 + $0x10] sm:$0xff] }
 0x154   : > { %1916 = vst.msk [vmem:[#allocation2 + $0x30] sm:$0xff] %vm302_vm4, %v1900_v43  ;;  %v1704_v19 = vadd.f32 %v1673_v22, %v1531_v7  ;;  %v1733_v27 = vld [vmem:[#allocation2 + $0x48] sm:$0xff]  ;;  %v3136_v54 = vpop.f32.mrb[52].mxu0 }
 0x155   : > { %1721 = vst.msk [vmem:[#allocation2 + $0x68] sm:$0xff] %vm302_vm4, %v1705_v17  ;;  %v1903_v25 = vadd.f32 %v3130_v42, %v1733_v27  ;;  %v1732_v31 = vld [vmem:[#allocation2 + $0x40] sm:$0xff]  ;;  %v1875_v35 = vpop.f32.mrb[53].mxu0 }
 0x156   : > { %1720 = vst.msk [vmem:[#allocation2 + $0x60] sm:$0xff] %vm302_vm4, %v1704_v19  ;;  %v1902_v16 = vadd.f32 %v1855_v60, %v1732_v31  ;;  %v3113_v13 = vpop.f32.mrb[54].mxu1  ;;  %v1931_v47 = vld [vmem:[#allocation2 + $0x28] sm:$0xff] }
 0x157   : > { %1919 = vst.msk [vmem:[#allocation2 + $0x48] sm:$0xff] %vm302_vm4, %v1903_v25  ;;  %v1707_v44 = vadd.f32 %v3113_v13, %v1534_v10  ;;  %v1683_v3 = vpop.f32.mrb[55].mxu1  ;;  %v1930_v58 = vld [vmem:[#allocation2 + $0x20] sm:$0xff] }
 0x158   : > { %1918 = vst.msk [vmem:[#allocation2 + $0x40] sm:$0xff] %vm302_vm4, %v1902_v16  ;;  %v1706_v4 = vadd.f32 %v1683_v3, %v1533_v50  ;;  %v1735_v5 = vld [vmem:[#allocation2 + $0x58] sm:$0xff]  ;;  %v3139_v9 = vpop.f32.mrb[54].mxu0 }
 0x159   : > { %1723 = vst.msk [vmem:[#allocation2 + $0x78] sm:$0xff] %vm302_vm4, %v1707_v44  ;;  %v1905_v12 = vadd.f32 %v3133_v40, %v1735_v5  ;;  %v1734_v14 = vld [vmem:[#allocation2 + $0x50] sm:$0xff]  ;;  %v1885_v15 = vpop.f32.mrb[55].mxu0 }
 0x15a   : > { %1722 = vst.msk [vmem:[#allocation2 + $0x70] sm:$0xff] %vm302_vm4, %v1706_v4  ;;  %v1904_v18 = vadd.f32 %v1865_v45, %v1734_v14  ;;  %v3144_v23 = vpop.f32.mrb[56].mxu1  ;;  %v1933_v46 = vld [vmem:[#allocation2 + $0x38] sm:$0xff] }
 0x15b   : > { %1921 = vst.msk [vmem:[#allocation2 + $0x58] sm:$0xff] %vm302_vm4, %v1905_v12  ;;  %v2101_v24 = vadd.f32 %v3144_v23, %v1927_v20  ;;  %v2021_v51 = vpop.f32.mrb[57].mxu1  ;;  %v1932_v43 = vld [vmem:[#allocation2 + $0x30] sm:$0xff] }
 0x15c   : > { %1920 = vst.msk [vmem:[#allocation2 + $0x50] sm:$0xff] %vm302_vm4, %v1904_v18  ;;  %v1737_v52 = vld [vmem:[#allocation2 + $0x68] sm:$0xff]  ;;  %v2100_v55 = vadd.f32 %v2021_v51, %v1926_v33  ;;  %v3170_v56 = vpop.f32.mrb[56].mxu0 }
 0x15d   : > { %2117 = vst.msk [vmem:[#allocation2 + $0x8] sm:$0xff] %vm302_vm4, %v2101_v24  ;;  %v1907_v57 = vadd.f32 %v3136_v54, %v1737_v52  ;;  %v1736_v59 = vld [vmem:[#allocation2 + $0x60] sm:$0xff]  ;;  %v2226_v61 = vpop.f32.mrb[57].mxu0 }
 0x15e   : > { %2116 = vst.msk [vmem:[#allocation2] sm:$0xff] %vm302_vm4, %v2100_v55  ;;  %v1906_v62 = vadd.f32 %v1875_v35, %v1736_v59  ;;  %v3147_v1 = vpop.f32.mrb[58].mxu1  ;;  %v1935_v25 = vld [vmem:[#allocation2 + $0x48] sm:$0xff] }
 0x15f   : > { %1923 = vst.msk [vmem:[#allocation2 + $0x68] sm:$0xff] %vm302_vm4, %v1907_v57  ;;  %v2103_v2 = vadd.f32 %v3147_v1, %v1929_v63  ;;  %v2031_v26 = vpop.f32.mrb[59].mxu1  ;;  %v1934_v16 = vld [vmem:[#allocation2 + $0x40] sm:$0xff] }
 0x160   : > { %1922 = vst.msk [vmem:[#allocation2 + $0x60] sm:$0xff] %vm302_vm4, %v1906_v62  ;;  %v1739_v28 = vld [vmem:[#allocation2 + $0x78] sm:$0xff]  ;;  %v2102_v32 = vadd.f32 %v2031_v26, %v1928_v6  ;;  %v3173_v34 = vpop.f32.mrb[58].mxu0 }
 0x161   : > { %2119 = vst.msk [vmem:[#allocation2 + $0x18] sm:$0xff] %vm302_vm4, %v2103_v2  ;;  %v1909_v37 = vadd.f32 %v3139_v9, %v1739_v28  ;;  %v1738_v39 = vld [vmem:[#allocation2 + $0x70] sm:$0xff]  ;;  %v2236_v41 = vpop.f32.mrb[59].mxu0 }
 0x162   : > { %2118 = vst.msk [vmem:[#allocation2 + $0x10] sm:$0xff] %vm302_vm4, %v2102_v32  ;;  %v1908_v42 = vadd.f32 %v1885_v15, %v1738_v39  ;;  %v3150_v49 = vpop.f32.mrb[60].mxu1  ;;  %v1937_v14 = vld [vmem:[#allocation2 + $0x58] sm:$0xff] }
 0x163   : > { %1925 = vst.msk [vmem:[#allocation2 + $0x78] sm:$0xff] %vm302_vm4, %v1909_v37  ;;  %v2105_v60 = vadd.f32 %v3150_v49, %v1931_v47  ;;  %v2041_v53 = vpop.f32.mrb[61].mxu1  ;;  %v1936_v24 = vld [vmem:[#allocation2 + $0x50] sm:$0xff] }
 0x164   : > { %1924 = vst.msk [vmem:[#allocation2 + $0x70] sm:$0xff] %vm302_vm4, %v1908_v42  ;;  %v2104_v11 = vadd.f32 %v2041_v53, %v1930_v58  ;;  %v2133_v21 = vld [vmem:[#allocation2 + $0x8] sm:$0xff]  ;;  %v3176_v29 = vpop.f32.mrb[60].mxu0 }
 0x165   : > { %2121 = vst.msk [vmem:[#allocation2 + $0x28] sm:$0xff] %vm302_vm4, %v2105_v60  ;;  %v2306_v30 = vadd.f32 %v3170_v56, %v2133_v21  ;;  %v2132_v36 = vld [vmem:[#allocation2] sm:$0xff]  ;;  %v2246_v38 = vpop.f32.mrb[61].mxu0 }
 0x166   : > { %2120 = vst.msk [vmem:[#allocation2 + $0x20] sm:$0xff] %vm302_vm4, %v2104_v11  ;;  %v2305_v40 = vadd.f32 %v2226_v61, %v2132_v36  ;;  %v3153_v48 = vpop.f32.mrb[62].mxu1  ;;  %v1939_v28 = vld [vmem:[#allocation2 + $0x68] sm:$0xff] }
 0x167   : > { %2322 = vst.msk [vmem:[#allocation2 + $0x8] sm:$0xff] %vm302_vm4, %v2306_v30  ;;  %v2107_v45 = vadd.f32 %v3153_v48, %v1933_v46  ;;  %v2051_v0 = vpop.f32.mrb[63].mxu1  ;;  %v1938_v42 = vld [vmem:[#allocation2 + $0x60] sm:$0xff] }
 0x168   : > { %2321 = vst.msk [vmem:[#allocation2] sm:$0xff] %vm302_vm4, %v2305_v40  ;;  %v2106_v8 = vadd.f32 %v2051_v0, %v1932_v43  ;;  %v2135_v17 = vld [vmem:[#allocation2 + $0x18] sm:$0xff]  ;;  %v3179_v7 = vpop.f32.mrb[62].mxu0 }
 0x169   : > { %2123 = vst.msk [vmem:[#allocation2 + $0x38] sm:$0xff] %vm302_vm4, %v2107_v45  ;;  %v2308_v22 = vadd.f32 %v3173_v34, %v2135_v17  ;;  %v2134_v19 = vld [vmem:[#allocation2 + $0x10] sm:$0xff]  ;;  %v2256_v27 = vpop.f32.mrb[63].mxu0 }
 0x16a   : > { %2122 = vst.msk [vmem:[#allocation2 + $0x30] sm:$0xff] %vm302_vm4, %v2106_v8  ;;  %v2307_v54 = vadd.f32 %v2236_v41, %v2134_v19  ;;  %v3156_v31 = vpop.f32.mrb[64].mxu1  ;;  %v1941_v19 = vld [vmem:[#allocation2 + $0x78] sm:$0xff] }
 0x16b   : > { %2324 = vst.msk [vmem:[#allocation2 + $0x18] sm:$0xff] %vm302_vm4, %v2308_v22  ;;  %v2109_v35 = vadd.f32 %v3156_v31, %v1935_v25  ;;  %v2061_v10 = vpop.f32.mrb[65].mxu1 }
 0x16c   : > { %2323 = vst.msk [vmem:[#allocation2 + $0x10] sm:$0xff] %vm302_vm4, %v2307_v54  ;;  %v2108_v13 = vadd.f32 %v2061_v10, %v1934_v16  ;;  %v2137_v44 = vld [vmem:[#allocation2 + $0x28] sm:$0xff]  ;;  %v3182_v50 = vpop.f32.mrb[64].mxu0 }
 0x16d   : > { %2125 = vst.msk [vmem:[#allocation2 + $0x48] sm:$0xff] %vm302_vm4, %v2109_v35  ;;  %v2310_v3 = vadd.f32 %v3176_v29, %v2137_v44  ;;  %v2136_v4 = vld [vmem:[#allocation2 + $0x20] sm:$0xff]  ;;  %v2266_v5 = vpop.f32.mrb[65].mxu0 }
 0x16e   : > { %v2338_v9 = vld [vmem:[#allocation2 + $0x8] sm:$0xff]  ;;  %2124 = vst.msk [vmem:[#allocation2 + $0x40] sm:$0xff] %vm302_vm4, %v2108_v13  ;;  %v2309_v12 = vadd.f32 %v2246_v38, %v2136_v4  ;;  %v3159_v15 = vpop.f32.mrb[66].mxu1 }
 0x16f   : > { %2354 = vst.msk [vmem:[%s4084_s9 + $0x8] sm:$0xff] %vm302_vm4, %v2338_v9  ;;  %v2409_v18 = vmul.f32 %v2338_v9, %v2338_v9  ;;  %v2337_v20 = vld [vmem:[#allocation2] sm:$0xff]  ;;  %2326 = vst.msk [vmem:[#allocation2 + $0x28] sm:$0xff] %vm302_vm4, %v2310_v3  ;;  %v2111_v23 = vadd.f32 %v3159_v15, %v1937_v14  ;;  %v2071_v33 = vpop.f32.mrb[67].mxu1  ;;  %v2370_v51 = vsel %vm302_vm4, %v2338_v9, 0.0 }
 0x170   : > { %2353 = vst.msk [vmem:[%s4084_s9] sm:$0xff] %vm302_vm4, %v2337_v20  ;;  %v2369_v52 = vsel %vm302_vm4, %v2337_v20, 0.0  ;;  %v2408_v55 = vmul.f32 %v2337_v20, %v2337_v20  ;;  %2325 = vst.msk [vmem:[#allocation2 + $0x20] sm:$0xff] %vm302_vm4, %v2309_v12  ;;  %v2110_v56 = vadd.f32 %v2071_v33, %v1936_v24  ;;  %v2139_v57 = vld [vmem:[#allocation2 + $0x38] sm:$0xff]  ;;  %v3185_v59 = vpop.f32.mrb[66].mxu0 }
 0x171   : > { %2127 = vst.msk [vmem:[#allocation2 + $0x58] sm:$0xff] %vm302_vm4, %v2111_v23  ;;  %v2312_v61 = vadd.f32 %v3179_v7, %v2139_v57  ;;  %v2138_v62 = vld [vmem:[#allocation2 + $0x30] sm:$0xff]  ;;  %v4098_v63 = vpop.f32.mrb[67].mxu0  ;;  %v2425_v1 = vsel %vm302_vm4, %v2409_v18, 0.0  ;;  %v2371_v34 = vadd.f32 %v2370_v51, %v2369_v52 }
 0x172   : > { %v2424_v2 = vsel %vm302_vm4, %v2408_v55, 0.0  ;;  %v2340_v6 = vld [vmem:[#allocation2 + $0x18] sm:$0xff]  ;;  %2126 = vst.msk [vmem:[#allocation2 + $0x50] sm:$0xff] %vm302_vm4, %v2110_v56  ;;  %v2311_v26 = vadd.f32 %v2256_v27, %v2138_v62  ;;  %v3162_v32 = vpop.f32.mrb[68].mxu1  ;;  %v1940_v27 = vld [vmem:[#allocation2 + $0x70] sm:$0xff] }
 0x173   : > { %2356 = vst.msk [vmem:[%s4084_s9 + $0x18] sm:$0xff] %vm302_vm4, %v2340_v6  ;;  %v2411_v37 = vmul.f32 %v2340_v6, %v2340_v6  ;;  %v2339_v39 = vld [vmem:[#allocation2 + $0x10] sm:$0xff]  ;;  %2328 = vst.msk [vmem:[#allocation2 + $0x38] sm:$0xff] %vm302_vm4, %v2312_v61  ;;  %v2113_v41 = vadd.f32 %v3162_v32, %v1939_v28  ;;  %v2081_v47 = vpop.f32.mrb[69].mxu1  ;;  %v2426_v21 = vadd.f32 %v2425_v1, %v2424_v2  ;;  %v2374_v40 = vsel %vm302_vm4, %v2340_v6, 0.0 }
 0x174   : > { %2355 = vst.msk [vmem:[%s4084_s9 + $0x10] sm:$0xff] %vm302_vm4, %v2339_v39  ;;  %v2372_v49 = vsel %vm302_vm4, %v2339_v39, 0.0  ;;  %v2410_v60 = vmul.f32 %v2339_v39, %v2339_v39  ;;  %2327 = vst.msk [vmem:[#allocation2 + $0x30] sm:$0xff] %vm302_vm4, %v2311_v26  ;;  %v2112_v58 = vadd.f32 %v2081_v47, %v1938_v42  ;;  %v2141_v53 = vld [vmem:[#allocation2 + $0x48] sm:$0xff]  ;;  %v3188_v11 = vpop.f32.mrb[68].mxu0 }
 0x175   : > { %v2373_v29 = vadd.f32 %v2372_v49, %v2371_v34  ;;  %2129 = vst.msk [vmem:[#allocation2 + $0x68] sm:$0xff] %vm302_vm4, %v2113_v41  ;;  %v2314_v30 = vadd.f32 %v3182_v50, %v2141_v53  ;;  %v2140_v36 = vld [vmem:[#allocation2 + $0x40] sm:$0xff]  ;;  %v2286_v38 = vpop.f32.mrb[69].mxu0  ;;  %v2429_v0 = vsel %vm302_vm4, %v2411_v37, 0.0 }
 0x176   : > { %v2427_v46 = vsel %vm302_vm4, %v2410_v60, 0.0  ;;  %v2342_v48 = vld [vmem:[#allocation2 + $0x28] sm:$0xff]  ;;  %2128 = vst.msk [vmem:[#allocation2 + $0x60] sm:$0xff] %vm302_vm4, %v2112_v58  ;;  %v2313_v45 = vadd.f32 %v2266_v5, %v2140_v36  ;;  %v3165_v43 = vpop.f32.mrb[70].mxu1 }
 0x177   : > { %v2428_v8 = vadd.f32 %v2427_v46, %v2426_v21  ;;  %2358 = vst.msk [vmem:[%s4084_s9 + $0x28] sm:$0xff] %vm302_vm4, %v2342_v48  ;;  %v2413_v17 = vmul.f32 %v2342_v48, %v2342_v48  ;;  %v2341_v7 = vld [vmem:[#allocation2 + $0x20] sm:$0xff]  ;;  %v2375_v22 = vadd.f32 %v2374_v40, %v2373_v29  ;;  %2330 = vst.msk [vmem:[#allocation2 + $0x48] sm:$0xff] %vm302_vm4, %v2314_v30  ;;  %v2091_v54 = vpop.f32.mrb[71].mxu1  ;;  %v2378_v9 = vsel %vm302_vm4, %v2342_v48, 0.0 }
 0x178   : > { %2357 = vst.msk [vmem:[%s4084_s9 + $0x20] sm:$0xff] %vm302_vm4, %v2341_v7  ;;  %v2376_v25 = vsel %vm302_vm4, %v2341_v7, 0.0  ;;  %v2412_v31 = vmul.f32 %v2341_v7, %v2341_v7  ;;  %2329 = vst.msk [vmem:[#allocation2 + $0x40] sm:$0xff] %vm302_vm4, %v2313_v45  ;;  %v2115_v35 = vadd.f32 %v3165_v43, %v1941_v19  ;;  %v2114_v16 = vadd.f32 %v2091_v54, %v1940_v27  ;;  %v2143_v10 = vld [vmem:[#allocation2 + $0x58] sm:$0xff]  ;;  %v3191_v13 = vpop.f32.mrb[70].mxu0 }
 0x179   : > { %v2377_v44 = vadd.f32 %v2376_v25, %v2375_v22  ;;  %v2430_v50 = vadd.f32 %v2429_v0, %v2428_v8  ;;  %v2316_v3 = vadd.f32 %v3185_v59, %v2143_v10  ;;  %v2142_v4 = vld [vmem:[#allocation2 + $0x50] sm:$0xff]  ;;  %v2296_v5 = vpop.f32.mrb[71].mxu0  ;;  %v2433_v24 = vsel %vm302_vm4, %v2413_v17, 0.0 }
 0x17a   : > { %v2431_v12 = vsel %vm302_vm4, %v2412_v31, 0.0  ;;  %v2344_v14 = vld [vmem:[#allocation2 + $0x38] sm:$0xff]  ;;  %2131 = vst.msk [vmem:[#allocation2 + $0x78] sm:$0xff] %vm302_vm4, %v2115_v35  ;;  %2130 = vst.msk [vmem:[#allocation2 + $0x70] sm:$0xff] %vm302_vm4, %v2114_v16  ;;  %v2315_v15 = vadd.f32 %v4098_v63, %v2142_v4 }
 0x17b   : > { %v2432_v18 = vadd.f32 %v2431_v12, %v2430_v50  ;;  %2360 = vst.msk [vmem:[%s4084_s9 + $0x38] sm:$0xff] %vm302_vm4, %v2344_v14  ;;  %v2343_v20 = vld [vmem:[#allocation2 + $0x30] sm:$0xff]  ;;  %v2379_v23 = vadd.f32 %v2378_v9, %v2377_v44  ;;  %2332 = vst.msk [vmem:[#allocation2 + $0x58] sm:$0xff] %vm302_vm4, %v2316_v3  ;;  %v2415_v33 = vmul.f32 %v2344_v14, %v2344_v14  ;;  %v2382_v62 = vsel %vm302_vm4, %v2344_v14, 0.0 }
 0x17c   : > { %2359 = vst.msk [vmem:[%s4084_s9 + $0x30] sm:$0xff] %vm302_vm4, %v2343_v20  ;;  %v2380_v51 = vsel %vm302_vm4, %v2343_v20, 0.0  ;;  %v2414_v52 = vmul.f32 %v2343_v20, %v2343_v20  ;;  %2331 = vst.msk [vmem:[#allocation2 + $0x50] sm:$0xff] %vm302_vm4, %v2315_v15  ;;  %v2145_v55 = vld [vmem:[#allocation2 + $0x68] sm:$0xff] }
 0x17d   : > { %v2381_v56 = vadd.f32 %v2380_v51, %v2379_v23  ;;  %v2434_v57 = vadd.f32 %v2433_v24, %v2432_v18  ;;  %v2318_v59 = vadd.f32 %v3188_v11, %v2145_v55  ;;  %v2144_v61 = vld [vmem:[#allocation2 + $0x60] sm:$0xff]  ;;  %v2437_v32 = vsel %vm302_vm4, %v2415_v33, 0.0 }
 0x17e   : > { %v2435_v63 = vsel %vm302_vm4, %v2414_v52, 0.0  ;;  %v2346_v1 = vld [vmem:[#allocation2 + $0x48] sm:$0xff]  ;;  %v2317_v2 = vadd.f32 %v2286_v38, %v2144_v61 }
 0x17f   : > { %v2436_v6 = vadd.f32 %v2435_v63, %v2434_v57  ;;  %2362 = vst.msk [vmem:[%s4084_s9 + $0x48] sm:$0xff] %vm302_vm4, %v2346_v1  ;;  %v2345_v26 = vld [vmem:[#allocation2 + $0x40] sm:$0xff]  ;;  %v2383_v28 = vadd.f32 %v2382_v62, %v2381_v56  ;;  %2334 = vst.msk [vmem:[#allocation2 + $0x68] sm:$0xff] %vm302_vm4, %v2318_v59  ;;  %v2417_v34 = vmul.f32 %v2346_v1, %v2346_v1  ;;  %v2386_v60 = vsel %vm302_vm4, %v2346_v1, 0.0 }
 0x180   : > { %2361 = vst.msk [vmem:[%s4084_s9 + $0x40] sm:$0xff] %vm302_vm4, %v2345_v26  ;;  %v2384_v37 = vsel %vm302_vm4, %v2345_v26, 0.0  ;;  %v2416_v39 = vmul.f32 %v2345_v26, %v2345_v26  ;;  %2333 = vst.msk [vmem:[#allocation2 + $0x60] sm:$0xff] %vm302_vm4, %v2317_v2 }
 0x181   : > { %v2385_v41 = vadd.f32 %v2384_v37, %v2383_v28  ;;  %v2438_v42 = vadd.f32 %v2437_v32, %v2436_v6  ;;  %v2147_v47 = vld [vmem:[#allocation2 + $0x78] sm:$0xff]  ;;  %v2146_v49 = vld [vmem:[#allocation2 + $0x70] sm:$0xff]  ;;  %v2441_v38 = vsel %vm302_vm4, %v2417_v34, 0.0 }
 0x182   : > { %v2439_v58 = vsel %vm302_vm4, %v2416_v39, 0.0  ;;  %v2348_v53 = vld [vmem:[#allocation2 + $0x58] sm:$0xff]  ;;  %v2320_v11 = vadd.f32 %v3191_v13, %v2147_v47  ;;  %v2319_v21 = vadd.f32 %v2296_v5, %v2146_v49 }
 0x183   : > { %v2440_v29 = vadd.f32 %v2439_v58, %v2438_v42  ;;  %2364 = vst.msk [vmem:[%s4084_s9 + $0x58] sm:$0xff] %vm302_vm4, %v2348_v53  ;;  %v2347_v30 = vld [vmem:[#allocation2 + $0x50] sm:$0xff]  ;;  %v2387_v36 = vadd.f32 %v2386_v60, %v2385_v41  ;;  %v2419_v40 = vmul.f32 %v2348_v53, %v2348_v53  ;;  %v2390_v0 = vsel %vm302_vm4, %v2348_v53, 0.0 }
 0x184   : > { %2363 = vst.msk [vmem:[%s4084_s9 + $0x50] sm:$0xff] %vm302_vm4, %v2347_v30  ;;  %v2388_v46 = vsel %vm302_vm4, %v2347_v30, 0.0  ;;  %v2418_v48 = vmul.f32 %v2347_v30, %v2347_v30  ;;  %2336 = vst.msk [vmem:[#allocation2 + $0x78] sm:$0xff] %vm302_vm4, %v2320_v11 }
 0x185   : > { %2335 = vst.msk [vmem:[#allocation2 + $0x70] sm:$0xff] %vm302_vm4, %v2319_v21  ;;  %v2389_v45 = vadd.f32 %v2388_v46, %v2387_v36  ;;  %v2442_v43 = vadd.f32 %v2441_v38, %v2440_v29  ;;  %v2445_v27 = vsel %vm302_vm4, %v2419_v40, 0.0 }
 0x186   : > { %v2443_v8 = vsel %vm302_vm4, %v2418_v48, 0.0  ;;  %v2350_v17 = vld [vmem:[#allocation2 + $0x68] sm:$0xff] }
 0x187   : > { %v2444_v7 = vadd.f32 %v2443_v8, %v2442_v43  ;;  %2366 = vst.msk [vmem:[%s4084_s9 + $0x68] sm:$0xff] %vm302_vm4, %v2350_v17  ;;  %v2349_v22 = vld [vmem:[#allocation2 + $0x60] sm:$0xff]  ;;  %v2391_v19 = vadd.f32 %v2390_v0, %v2389_v45  ;;  %v2421_v54 = vmul.f32 %v2350_v17, %v2350_v17  ;;  %v2394_v10 = vsel %vm302_vm4, %v2350_v17, 0.0 }
 0x188   : > { %2365 = vst.msk [vmem:[%s4084_s9 + $0x60] sm:$0xff] %vm302_vm4, %v2349_v22  ;;  %v2392_v25 = vsel %vm302_vm4, %v2349_v22, 0.0  ;;  %v2420_v31 = vmul.f32 %v2349_v22, %v2349_v22 }
 0x189   : > { %v2393_v35 = vadd.f32 %v2392_v25, %v2391_v19  ;;  %v2446_v16 = vadd.f32 %v2445_v27, %v2444_v7  ;;  %v2449_v5 = vsel %vm302_vm4, %v2421_v54, 0.0 }
 0x18a   : > { %v2447_v13 = vsel %vm302_vm4, %v2420_v31, 0.0 }
 0x18b   : > { %v2448_v44 = vadd.f32 %v2447_v13, %v2446_v16  ;;  %v2352_v50 = vld [vmem:[#allocation2 + $0x78] sm:$0xff]  ;;  %v2395_v4 = vadd.f32 %v2394_v10, %v2393_v35 }
 0x18c   : > { %v2351_v3 = vld [vmem:[#allocation2 + $0x70] sm:$0xff]  ;;  %2368 = vst.msk [vmem:[%s4084_s9 + $0x78] sm:$0xff] %vm302_vm4, %v2352_v50  ;;  %v2423_v9 = vmul.f32 %v2352_v50, %v2352_v50  ;;  %v2398_v20 = vsel %vm302_vm4, %v2352_v50, 0.0 }
 0x18d   : > { %2367 = vst.msk [vmem:[%s4084_s9 + $0x70] sm:$0xff] %vm302_vm4, %v2351_v3  ;;  %v2396_v12 = vsel %vm302_vm4, %v2351_v3, 0.0  ;;  %v2422_v14 = vmul.f32 %v2351_v3, %v2351_v3  ;;  %v2450_v18 = vadd.f32 %v2449_v5, %v2448_v44 }
 0x18e   : > { %v2397_v15 = vadd.f32 %v2396_v12, %v2395_v4  ;;  %v2453_v51 = vsel %vm302_vm4, %v2423_v9, 0.0 }
 0x18f   : > { %v2451_v23 = vsel %vm302_vm4, %v2422_v14, 0.0 }
 0x190   : > { %v2399_v24 = vadd.f32 %v2398_v20, %v2397_v15  ;;  %v2452_v33 = vadd.f32 %v2451_v23, %v2450_v18 }
 0x192   : > { %v2400_v52 = vrot.slane %v2399_v24, 4  ;;  %v2454_v55 = vadd.f32 %v2453_v51, %v2452_v33 }
 0x194   : > { %v2401_v56 = vadd.f32 %v2400_v52, %v2399_v24  ;;  %v2455_v57 = vrot.slane %v2454_v55, 4 }
 0x196   : > { %v2402_v59 = vrot.slane %v2401_v56, 2  ;;  %v2456_v61 = vadd.f32 %v2455_v57, %v2454_v55 }
 0x198   : > { %v2403_v62 = vadd.f32 %v2402_v59, %v2401_v56  ;;  %v2457_v63 = vrot.slane %v2456_v61, 2 }
 0x19a   : > { %v2404_v1 = vrot.slane %v2403_v62, 1  ;;  %v2458_v2 = vadd.f32 %v2457_v63, %v2456_v61 }
 0x19c   : > { %v2405_v6 = vadd.f32 %v2404_v1, %v2403_v62  ;;  %v2459_v26 = vrot.slane %v2458_v2, 1 }
 0x19e   : > { %2407 = vst.msk [vmem:[%s252_s14] sm:$0x1] %vm2406_vm5, %v2405_v6  ;;  %v2460_v28 = vadd.f32 %v2459_v26, %v2458_v2 }
 0x1a0   : > { %2461 = vst.msk [vmem:[%s259_s24] sm:$0x1] %vm2406_vm5, %v2460_v28 }
 0x1a1 PF: > { %s15_s19 = sadd.s32 1, %s3274_s19   ;;  %s4206_s15 = smov %s3266_s17 }
 0x1a2   : > { %p12_p8 = scmp.ge.s32.totalorder %s15_s19, 6   ;;  %s4207_s16 = smov %s3270_s18 }
 0x1a3   : > { %s4208_s17 = smov %s4211_s20  ;;  %s4209_s18 = smov %s4215_s21 }
 0x1a4   :  { %14 = sbr.rel (!%p12_p8) target bundleno = 3 (0x3), region = 83 }

</bundles_post_ra>
